<compile_context>
chip_gen: v7x
topology: tpu7x:2x2x1
jax: 0.10.0
libtpu: 0.0.40
codegen_flags: <defaults>
</compile_context>

<pallas_src>
import numpy as np
import jax
import jax.numpy as jnp
from jax import lax
from jax.experimental import pallas as pl
from jax.experimental.pallas import tpu as pltpu


# ----------------------------- forward ------------------------------------- #

def graph2grid_forward(graph_data, grid_data, lat_lon_coords, params, eps=1e-5):
    B, T, N, Cg = graph_data.shape
    _, T2, C, H, W = grid_data.shape
    assert T == T2, "graph and grid time dims must match for the concat"
    HW = H * W
    Fh = params["w_graph"].shape[0]
    F = 2 * Fh

    # --- glue (tiny tensors only; no big-tensor transpose) ------------------ #
    lat = jnp.clip((lat_lon_coords[..., 0] * H).astype(jnp.int32), 0, H - 1)
    lon = jnp.clip((lat_lon_coords[..., 1] * W).astype(jnp.int32), 0, W - 1)
    flat_idx = (lat * W + lon).astype(jnp.int32)      # (B, N), scalar-prefetched

    grid_cmaj = grid_data.reshape(B, T, C, HW)        # pure reshape, channel-major
    graph_t = jnp.swapaxes(graph_data, 2, 3)          # (B, T, Cg, N), ~1 KiB

    wg = params["w_graph"].astype(jnp.float32)        # (Fh, Cg), used as-is
    wr = params["w_grid"].astype(jnp.float32)         # (Fh, C),  used as-is
    # b_graph / b_grid are per-feature constants; training-mode BatchNorm
    # subtracts the per-feature mean, which cancels them exactly, so they are
    # folded away (never read by the kernels).

    # --- shared in-kernel compute: per-t (interp, gridp) in (F, HW) layout -- #
    def _per_t_features(idx_ref, graph_ref, grid_ref, wg_ref, wr_ref):
        b = pl.program_id(0)
        # One-hot scatter S[n, p] = (flat_idx[b, n] == p), built in VMEM from
        # SMEM-prefetched indices (never materialized in HBM).
        cols = lax.broadcasted_iota(jnp.int32, (N, HW), 1)
        rows = lax.broadcasted_iota(jnp.int32, (N, HW), 0)
        tgt = jnp.zeros((N, HW), jnp.int32)
        for n in range(N):   # N is small here; TODO(synk): vectorize for large N
            tgt = jnp.where(rows == n, idx_ref[b, n], tgt)
        scat = (cols == tgt).astype(jnp.float32)      # (N, HW)

        wgm = wg_ref[...]                             # (Fh, Cg)
        wrm = wr_ref[...]                             # (Fh, C)
        feats = []
        for t in range(T):                            # whole T stacked per step
            x_t = graph_ref[0, t]                     # (Cg, N)
            scat_t = jnp.dot(x_t, scat,
                             preferred_element_type=jnp.float32)        # (Cg, HW)
            interp_t = jnp.dot(wgm, scat_t,
                               preferred_element_type=jnp.float32)      # (Fh, HW)
            gridp_t = jnp.dot(wrm, grid_ref[0, t],
                              preferred_element_type=jnp.float32)       # (Fh, HW)
            feats.append((interp_t, gridp_t))
        return feats

    # Pass 1: per-batch partial BN sums -> 2 x (B, F, 1).  No big HBM traffic.
    def stats_kernel(idx_ref, graph_ref, grid_ref, wg_ref, wr_ref,
                     sum_ref, sq_ref):
        s1g = jnp.zeros((Fh, 1), jnp.float32)
        s2g = jnp.zeros((Fh, 1), jnp.float32)
        s1r = jnp.zeros((Fh, 1), jnp.float32)
        s2r = jnp.zeros((Fh, 1), jnp.float32)
        for interp_t, gridp_t in _per_t_features(idx_ref, graph_ref, grid_ref,
                                                 wg_ref, wr_ref):
            s1g += jnp.sum(interp_t, axis=1, keepdims=True)
            s2g += jnp.sum(interp_t * interp_t, axis=1, keepdims=True)
            s1r += jnp.sum(gridp_t, axis=1, keepdims=True)
            s2r += jnp.sum(gridp_t * gridp_t, axis=1, keepdims=True)
        sum_ref[0] = jnp.concatenate([s1g, s1r], axis=0)     # (F, 1)
        sq_ref[0] = jnp.concatenate([s2g, s2r], axis=0)      # (F, 1)

    # Pass 2: recompute the cheap matmuls, apply the folded BN scale/shift and
    # write the result once, already in (B, T, F, HW) layout (lane axis = HW).
    # Halves are written into disjoint feature slices (no concatenate copy).
    def out_kernel(idx_ref, graph_ref, grid_ref, wg_ref, wr_ref,
                   scale_ref, shift_ref, out_ref):
        sc_g = scale_ref[0:Fh, :]
        sh_g = shift_ref[0:Fh, :]
        sc_r = scale_ref[Fh:, :]
        sh_r = shift_ref[Fh:, :]
        feats = _per_t_features(idx_ref, graph_ref, grid_ref, wg_ref, wr_ref)
        for t, (interp_t, gridp_t) in enumerate(feats):
            out_ref[0, t, 0:Fh, :] = interp_t * sc_g + sh_g
            out_ref[0, t, Fh:, :] = gridp_t * sc_r + sh_r

    common_in_specs = [
        pl.BlockSpec((1, T, Cg, N), lambda b, idx: (b, 0, 0, 0)),    # graph_t
        pl.BlockSpec((1, T, C, HW), lambda b, idx: (b, 0, 0, 0)),    # grid_cmaj
        pl.BlockSpec((Fh, Cg), lambda b, idx: (0, 0)),               # W_graph
        pl.BlockSpec((Fh, C), lambda b, idx: (0, 0)),                # W_grid
    ]

    s_sum, s_sq = pl.pallas_call(
        stats_kernel,
        out_shape=(jax.ShapeDtypeStruct((B, F, 1), jnp.float32),
                   jax.ShapeDtypeStruct((B, F, 1), jnp.float32)),
        grid_spec=pltpu.PrefetchScalarGridSpec(
            num_scalar_prefetch=1,
            grid=(B,),
            in_specs=common_in_specs,
            out_specs=(pl.BlockSpec((1, F, 1), lambda b, idx: (b, 0, 0)),
                       pl.BlockSpec((1, F, 1), lambda b, idx: (b, 0, 0))),
        ),
        compiler_params=pltpu.CompilerParams(
            dimension_semantics=("parallel",)),
    )(flat_idx, graph_t, grid_cmaj, wg, wr)

    # Finalize BatchNorm3d statistics (training mode, biased variance).
    # NOTE: E[x^2] - mean^2 in f32 is fine at these sizes; use a shifted /
    # Welford-style finalize for very large B*T*HW.
    count = float(B * T * HW)
    mean = jnp.sum(s_sum[:, :, 0], axis=0) / count           # (F,)
    var = jnp.sum(s_sq[:, :, 0], axis=0) / count - mean * mean
    inv = params["gamma"] / jnp.sqrt(var + eps)
    scale = inv.reshape(F, 1).astype(jnp.float32)
    shift = (params["beta"] - mean * inv).reshape(F, 1).astype(jnp.float32)

    out = pl.pallas_call(
        out_kernel,
        out_shape=jax.ShapeDtypeStruct((B, T, F, HW), jnp.float32),
        grid_spec=pltpu.PrefetchScalarGridSpec(
            num_scalar_prefetch=1,
            grid=(B,),
            in_specs=common_in_specs + [
                pl.BlockSpec((F, 1), lambda b, idx: (0, 0)),         # BN scale
                pl.BlockSpec((F, 1), lambda b, idx: (0, 0)),         # BN shift
            ],
            out_specs=pl.BlockSpec((1, T, F, HW), lambda b, idx: (b, 0, 0, 0)),
        ),
        compiler_params=pltpu.CompilerParams(
            dimension_semantics=("parallel",)),
    )(flat_idx, graph_t, grid_cmaj, wg, wr, scale, shift)

    # Already feature-major: a pure reshape lands PyTorch's (B, T, F, H, W).
    return out.reshape(B, T, F, H, W)


# ----------------------------- pure-JAX reference -------------------------- #

def reference_forward(graph_data, grid_data, lat_lon_coords, params, eps=1e-5):
    B, T, N, Cg = graph_data.shape
    _, _, C, H, W = grid_data.shape
    lat = jnp.clip((lat_lon_coords[..., 0] * H).astype(jnp.int32), 0, H - 1)
    lon = jnp.clip((lat_lon_coords[..., 1] * W).astype(jnp.int32), 0, W - 1)

    grid_maps = jnp.zeros((B, T, Cg, H, W), jnp.float32)
    for b in range(B):
        for t in range(T):
            gm = jnp.zeros((Cg, H, W), jnp.float32).at[:, lat[b], lon[b]].add(
                graph_data[b, t].T)
            grid_maps = grid_maps.at[b, t].set(gm)

    interp = jnp.transpose(grid_maps, (0, 1, 3, 4, 2)) @ params["w_graph"].T + params["b_graph"]
    interp = jnp.transpose(interp, (0, 1, 4, 2, 3))
    grid_ode = jnp.transpose(grid_data, (0, 1, 3, 4, 2))       # identity ode_model
    gridp = grid_ode @ params["w_grid"].T + params["b_grid"]
    gridp = jnp.transpose(gridp, (0, 1, 4, 2, 3))
    combined = jnp.concatenate([interp, gridp], axis=2)        # (B, T, F, H, W)

    x = jnp.transpose(combined, (0, 2, 1, 3, 4))               # (B, F, T, H, W)
    mean = x.mean(axis=(0, 2, 3, 4), keepdims=True)
    var = x.var(axis=(0, 2, 3, 4), keepdims=True)
    xn = (x - mean) / jnp.sqrt(var + eps)
    xn = xn * params["gamma"].reshape(1, -1, 1, 1, 1) + params["beta"].reshape(1, -1, 1, 1, 1)
    return jnp.transpose(xn, (0, 2, 1, 3, 4))


# ----------------------------- main ---------------------------------------- #

if __name__ == "__main__":
    B, T, N = 2, 4, 8
    Cg = 4          # graph_features
    C = 4           # grid_channels
    H = W = 16
    feature_dims = 32
    Fh = feature_dims // 2

    key = jax.random.PRNGKey(0)
    k = jax.random.split(key, 8)
    graph_data = jax.random.normal(k[0], (B, T, N, Cg), jnp.float32)
    grid_data = jax.random.normal(k[1], (B, T, C, H, W), jnp.float32)
    lat_lon_coords = jax.random.uniform(k[2], (B, N, 2), jnp.float32)

    params = {
        "w_graph": 0.1 * jax.random.normal(k[3], (Fh, Cg), jnp.float32),
        "b_graph": 0.1 * jax.random.normal(k[4], (Fh,), jnp.float32),
        "w_grid": 0.1 * jax.random.normal(k[5], (Fh, C), jnp.float32),
        "b_grid": 0.1 * jax.random.normal(k[6], (Fh,), jnp.float32),
        # BatchNorm3d default init: weight = 1, bias = 0
        "gamma": jnp.ones((feature_dims,), jnp.float32),
        "beta": jnp.zeros((feature_dims,), jnp.float32),
    }

    fwd = jax.jit(graph2grid_forward)
    out = fwd(graph_data, grid_data, lat_lon_coords, params)
    out = jax.block_until_ready(out)

    ref = reference_forward(graph_data, grid_data, lat_lon_coords, params)
    np.testing.assert_allclose(np.asarray(out), np.asarray(ref),
                               rtol=2e-3, atol=2e-3)
    print("KERNEL_OK")
</pallas_src>

<mosaic_0001>
module attributes {stable_mosaic.version = 11 : i64} {
  func.func @stats_kernel(%arg0: i32, %arg1: memref<2x8xi32, #tpu.memory_space<smem>>, %arg2: memref<1x4x4x8xf32, #tpu.memory_space<vmem>>, %arg3: memref<1x4x4x256xf32, #tpu.memory_space<vmem>>, %arg4: memref<16x4xf32, #tpu.memory_space<vmem>>, %arg5: memref<16x4xf32, #tpu.memory_space<vmem>>, %arg6: memref<1x32x1xf32, #tpu.memory_space<vmem>>, %arg7: memref<1x32x1xf32, #tpu.memory_space<vmem>>) attributes {dimension_semantics = [#tpu.dimension_semantics<parallel>], iteration_bounds = array<i64: 2>, scalar_prefetch = 1 : i64, scratch_operands = 0 : i64, tpu.core_type = #tpu.core_type<tc>, window_params = [{transform_indices = @transform_0, window_bounds = array<i64: 1, 4, 4, 8>}, {transform_indices = @transform_1, window_bounds = array<i64: 1, 4, 4, 256>}, {pipeline_mode = #tpu.pipeline_mode<synchronous>, transform_indices = @transform_2, window_bounds = array<i64: 16, 4>}, {pipeline_mode = #tpu.pipeline_mode<synchronous>, transform_indices = @transform_3, window_bounds = array<i64: 16, 4>}, {transform_indices = @transform_4, window_bounds = array<i64: 1, 32, 1>}, {transform_indices = @transform_5, window_bounds = array<i64: 1, 32, 1>}]} {
    %cst = arith.constant 0.000000e+00 : f32
    %0 = vector.broadcast %cst : f32 to vector<16x1xf32>
    %cst_0 = arith.constant 0.000000e+00 : f32
    %1 = vector.broadcast %cst_0 : f32 to vector<16x1xf32>
    %cst_1 = arith.constant 0.000000e+00 : f32
    %2 = vector.broadcast %cst_1 : f32 to vector<16x1xf32>
    %cst_2 = arith.constant 0.000000e+00 : f32
    %3 = vector.broadcast %cst_2 : f32 to vector<16x1xf32>
    %4 = tpu.iota {dimensions = array<i32: 1>} : vector<8x256xi32>
    %5 = tpu.iota {dimensions = array<i32: 0>} : vector<8x256xi32>
    %c0_i32 = arith.constant 0 : i32
    %6 = vector.broadcast %c0_i32 : i32 to vector<8x256xi32>
    %c0_i32_3 = arith.constant 0 : i32
    %7 = vector.broadcast %c0_i32_3 : i32 to vector<8x256xi32>
    %8 = arith.cmpi eq, %5, %7 : vector<8x256xi32>
    %9 = arith.index_cast %arg0 : i32 to index
    %c0 = arith.constant 0 : index
    %10 = memref.load %arg1[%9, %c0] : memref<2x8xi32, #tpu.memory_space<smem>>
    %11 = vector.broadcast %10 : i32 to vector<8x256xi32>
    %12 = arith.select %8, %11, %6 : vector<8x256xi1>, vector<8x256xi32>
    %c1_i32 = arith.constant 1 : i32
    %13 = vector.broadcast %c1_i32 : i32 to vector<8x256xi32>
    %14 = arith.cmpi eq, %5, %13 : vector<8x256xi32>
    %15 = arith.index_cast %arg0 : i32 to index
    %c1 = arith.constant 1 : index
    %16 = memref.load %arg1[%15, %c1] : memref<2x8xi32, #tpu.memory_space<smem>>
    %17 = vector.broadcast %16 : i32 to vector<8x256xi32>
    %18 = arith.select %14, %17, %12 : vector<8x256xi1>, vector<8x256xi32>
    %c2_i32 = arith.constant 2 : i32
    %19 = vector.broadcast %c2_i32 : i32 to vector<8x256xi32>
    %20 = arith.cmpi eq, %5, %19 : vector<8x256xi32>
    %21 = arith.index_cast %arg0 : i32 to index
    %c2 = arith.constant 2 : index
    %22 = memref.load %arg1[%21, %c2] : memref<2x8xi32, #tpu.memory_space<smem>>
    %23 = vector.broadcast %22 : i32 to vector<8x256xi32>
    %24 = arith.select %20, %23, %18 : vector<8x256xi1>, vector<8x256xi32>
    %c3_i32 = arith.constant 3 : i32
    %25 = vector.broadcast %c3_i32 : i32 to vector<8x256xi32>
    %26 = arith.cmpi eq, %5, %25 : vector<8x256xi32>
    %27 = arith.index_cast %arg0 : i32 to index
    %c3 = arith.constant 3 : index
    %28 = memref.load %arg1[%27, %c3] : memref<2x8xi32, #tpu.memory_space<smem>>
    %29 = vector.broadcast %28 : i32 to vector<8x256xi32>
    %30 = arith.select %26, %29, %24 : vector<8x256xi1>, vector<8x256xi32>
    %c4_i32 = arith.constant 4 : i32
    %31 = vector.broadcast %c4_i32 : i32 to vector<8x256xi32>
    %32 = arith.cmpi eq, %5, %31 : vector<8x256xi32>
    %33 = arith.index_cast %arg0 : i32 to index
    %c4 = arith.constant 4 : index
    %34 = memref.load %arg1[%33, %c4] : memref<2x8xi32, #tpu.memory_space<smem>>
    %35 = vector.broadcast %34 : i32 to vector<8x256xi32>
    %36 = arith.select %32, %35, %30 : vector<8x256xi1>, vector<8x256xi32>
    %c5_i32 = arith.constant 5 : i32
    %37 = vector.broadcast %c5_i32 : i32 to vector<8x256xi32>
    %38 = arith.cmpi eq, %5, %37 : vector<8x256xi32>
    %39 = arith.index_cast %arg0 : i32 to index
    %c5 = arith.constant 5 : index
    %40 = memref.load %arg1[%39, %c5] : memref<2x8xi32, #tpu.memory_space<smem>>
    %41 = vector.broadcast %40 : i32 to vector<8x256xi32>
    %42 = arith.select %38, %41, %36 : vector<8x256xi1>, vector<8x256xi32>
    %c6_i32 = arith.constant 6 : i32
    %43 = vector.broadcast %c6_i32 : i32 to vector<8x256xi32>
    %44 = arith.cmpi eq, %5, %43 : vector<8x256xi32>
    %45 = arith.index_cast %arg0 : i32 to index
    %c6 = arith.constant 6 : index
    %46 = memref.load %arg1[%45, %c6] : memref<2x8xi32, #tpu.memory_space<smem>>
    %47 = vector.broadcast %46 : i32 to vector<8x256xi32>
    %48 = arith.select %44, %47, %42 : vector<8x256xi1>, vector<8x256xi32>
    %c7_i32 = arith.constant 7 : i32
    %49 = vector.broadcast %c7_i32 : i32 to vector<8x256xi32>
    %50 = arith.cmpi eq, %5, %49 : vector<8x256xi32>
    %51 = arith.index_cast %arg0 : i32 to index
    %c7 = arith.constant 7 : index
    %52 = memref.load %arg1[%51, %c7] : memref<2x8xi32, #tpu.memory_space<smem>>
    %53 = vector.broadcast %52 : i32 to vector<8x256xi32>
    %54 = arith.select %50, %53, %48 : vector<8x256xi1>, vector<8x256xi32>
    %55 = arith.cmpi eq, %4, %54 : vector<8x256xi32>
    %56 = arith.extui %55 : vector<8x256xi1> to vector<8x256xi32>
    %57 = arith.sitofp %56 : vector<8x256xi32> to vector<8x256xf32>
    %c0_4 = arith.constant 0 : index
    %c0_5 = arith.constant 0 : index
    %58 = vector.load %arg4[%c0_4, %c0_5] : memref<16x4xf32, #tpu.memory_space<vmem>>, vector<16x4xf32>
    %c0_6 = arith.constant 0 : index
    %c0_7 = arith.constant 0 : index
    %59 = vector.load %arg5[%c0_6, %c0_7] : memref<16x4xf32, #tpu.memory_space<vmem>>, vector<16x4xf32>
    %c0_8 = arith.constant 0 : index
    %c0_9 = arith.constant 0 : index
    %c0_10 = arith.constant 0 : index
    %c0_11 = arith.constant 0 : index
    %60 = vector.load %arg2[%c0_8, %c0_9, %c0_10, %c0_11] : memref<1x4x4x8xf32, #tpu.memory_space<vmem>>, vector<1x1x4x8xf32>
    %61 = vector.shape_cast %60 : vector<1x1x4x8xf32> to vector<4x8xf32>
    %cst_12 = arith.constant dense<0.000000e+00> : vector<4x256xf32>
    %62 = tpu.matmul %61, %57, %cst_12 {dimension_numbers = #tpu.dot_dimension_numbers<[1], [0], [0], [1], [0, 0, 1, 1], [], []>} : vector<4x8xf32>, vector<8x256xf32>, vector<4x256xf32> -> vector<4x256xf32>
    %cst_13 = arith.constant dense<0.000000e+00> : vector<16x256xf32>
    %63 = tpu.matmul %58, %62, %cst_13 {dimension_numbers = #tpu.dot_dimension_numbers<[1], [0], [0], [1], [0, 0, 1, 1], [], []>} : vector<16x4xf32>, vector<4x256xf32>, vector<16x256xf32> -> vector<16x256xf32>
    %c0_14 = arith.constant 0 : index
    %c0_15 = arith.constant 0 : index
    %c0_16 = arith.constant 0 : index
    %c0_17 = arith.constant 0 : index
    %64 = vector.load %arg3[%c0_14, %c0_15, %c0_16, %c0_17] : memref<1x4x4x256xf32, #tpu.memory_space<vmem>>, vector<1x1x4x256xf32>
    %65 = vector.shape_cast %64 : vector<1x1x4x256xf32> to vector<4x256xf32>
    %cst_18 = arith.constant dense<0.000000e+00> : vector<16x256xf32>
    %66 = tpu.matmul %59, %65, %cst_18 {dimension_numbers = #tpu.dot_dimension_numbers<[1], [0], [0], [1], [0, 0, 1, 1], [], []>} : vector<16x4xf32>, vector<4x256xf32>, vector<16x256xf32> -> vector<16x256xf32>
    %c0_19 = arith.constant 0 : index
    %c1_20 = arith.constant 1 : index
    %c0_21 = arith.constant 0 : index
    %c0_22 = arith.constant 0 : index
    %67 = vector.load %arg2[%c0_19, %c1_20, %c0_21, %c0_22] : memref<1x4x4x8xf32, #tpu.memory_space<vmem>>, vector<1x1x4x8xf32>
    %68 = vector.shape_cast %67 : vector<1x1x4x8xf32> to vector<4x8xf32>
    %cst_23 = arith.constant dense<0.000000e+00> : vector<4x256xf32>
    %69 = tpu.matmul %68, %57, %cst_23 {dimension_numbers = #tpu.dot_dimension_numbers<[1], [0], [0], [1], [0, 0, 1, 1], [], []>} : vector<4x8xf32>, vector<8x256xf32>, vector<4x256xf32> -> vector<4x256xf32>
    %cst_24 = arith.constant dense<0.000000e+00> : vector<16x256xf32>
    %70 = tpu.matmul %58, %69, %cst_24 {dimension_numbers = #tpu.dot_dimension_numbers<[1], [0], [0], [1], [0, 0, 1, 1], [], []>} : vector<16x4xf32>, vector<4x256xf32>, vector<16x256xf32> -> vector<16x256xf32>
    %c0_25 = arith.constant 0 : index
    %c1_26 = arith.constant 1 : index
    %c0_27 = arith.constant 0 : index
    %c0_28 = arith.constant 0 : index
    %71 = vector.load %arg3[%c0_25, %c1_26, %c0_27, %c0_28] : memref<1x4x4x256xf32, #tpu.memory_space<vmem>>, vector<1x1x4x256xf32>
    %72 = vector.shape_cast %71 : vector<1x1x4x256xf32> to vector<4x256xf32>
    %cst_29 = arith.constant dense<0.000000e+00> : vector<16x256xf32>
    %73 = tpu.matmul %59, %72, %cst_29 {dimension_numbers = #tpu.dot_dimension_numbers<[1], [0], [0], [1], [0, 0, 1, 1], [], []>} : vector<16x4xf32>, vector<4x256xf32>, vector<16x256xf32> -> vector<16x256xf32>
    %c0_30 = arith.constant 0 : index
    %c2_31 = arith.constant 2 : index
    %c0_32 = arith.constant 0 : index
    %c0_33 = arith.constant 0 : index
    %74 = vector.load %arg2[%c0_30, %c2_31, %c0_32, %c0_33] : memref<1x4x4x8xf32, #tpu.memory_space<vmem>>, vector<1x1x4x8xf32>
    %75 = vector.shape_cast %74 : vector<1x1x4x8xf32> to vector<4x8xf32>
    %cst_34 = arith.constant dense<0.000000e+00> : vector<4x256xf32>
    %76 = tpu.matmul %75, %57, %cst_34 {dimension_numbers = #tpu.dot_dimension_numbers<[1], [0], [0], [1], [0, 0, 1, 1], [], []>} : vector<4x8xf32>, vector<8x256xf32>, vector<4x256xf32> -> vector<4x256xf32>
    %cst_35 = arith.constant dense<0.000000e+00> : vector<16x256xf32>
    %77 = tpu.matmul %58, %76, %cst_35 {dimension_numbers = #tpu.dot_dimension_numbers<[1], [0], [0], [1], [0, 0, 1, 1], [], []>} : vector<16x4xf32>, vector<4x256xf32>, vector<16x256xf32> -> vector<16x256xf32>
    %c0_36 = arith.constant 0 : index
    %c2_37 = arith.constant 2 : index
    %c0_38 = arith.constant 0 : index
    %c0_39 = arith.constant 0 : index
    %78 = vector.load %arg3[%c0_36, %c2_37, %c0_38, %c0_39] : memref<1x4x4x256xf32, #tpu.memory_space<vmem>>, vector<1x1x4x256xf32>
    %79 = vector.shape_cast %78 : vector<1x1x4x256xf32> to vector<4x256xf32>
    %cst_40 = arith.constant dense<0.000000e+00> : vector<16x256xf32>
    %80 = tpu.matmul %59, %79, %cst_40 {dimension_numbers = #tpu.dot_dimension_numbers<[1], [0], [0], [1], [0, 0, 1, 1], [], []>} : vector<16x4xf32>, vector<4x256xf32>, vector<16x256xf32> -> vector<16x256xf32>
    %c0_41 = arith.constant 0 : index
    %c3_42 = arith.constant 3 : index
    %c0_43 = arith.constant 0 : index
    %c0_44 = arith.constant 0 : index
    %81 = vector.load %arg2[%c0_41, %c3_42, %c0_43, %c0_44] : memref<1x4x4x8xf32, #tpu.memory_space<vmem>>, vector<1x1x4x8xf32>
    %82 = vector.shape_cast %81 : vector<1x1x4x8xf32> to vector<4x8xf32>
    %cst_45 = arith.constant dense<0.000000e+00> : vector<4x256xf32>
    %83 = tpu.matmul %82, %57, %cst_45 {dimension_numbers = #tpu.dot_dimension_numbers<[1], [0], [0], [1], [0, 0, 1, 1], [], []>} : vector<4x8xf32>, vector<8x256xf32>, vector<4x256xf32> -> vector<4x256xf32>
    %cst_46 = arith.constant dense<0.000000e+00> : vector<16x256xf32>
    %84 = tpu.matmul %58, %83, %cst_46 {dimension_numbers = #tpu.dot_dimension_numbers<[1], [0], [0], [1], [0, 0, 1, 1], [], []>} : vector<16x4xf32>, vector<4x256xf32>, vector<16x256xf32> -> vector<16x256xf32>
    %c0_47 = arith.constant 0 : index
    %c3_48 = arith.constant 3 : index
    %c0_49 = arith.constant 0 : index
    %c0_50 = arith.constant 0 : index
    %85 = vector.load %arg3[%c0_47, %c3_48, %c0_49, %c0_50] : memref<1x4x4x256xf32, #tpu.memory_space<vmem>>, vector<1x1x4x256xf32>
    %86 = vector.shape_cast %85 : vector<1x1x4x256xf32> to vector<4x256xf32>
    %cst_51 = arith.constant dense<0.000000e+00> : vector<16x256xf32>
    %87 = tpu.matmul %59, %86, %cst_51 {dimension_numbers = #tpu.dot_dimension_numbers<[1], [0], [0], [1], [0, 0, 1, 1], [], []>} : vector<16x4xf32>, vector<4x256xf32>, vector<16x256xf32> -> vector<16x256xf32>
    %cst_52 = arith.constant dense<0.000000e+00> : vector<16xf32>
    %88 = vector.multi_reduction <add>, %63, %cst_52 [1] : vector<16x256xf32> to vector<16xf32>
    %89 = vector.shape_cast %88 : vector<16xf32> to vector<16x1xf32>
    %90 = arith.addf %0, %89 : vector<16x1xf32>
    %91 = arith.mulf %63, %63 : vector<16x256xf32>
    %cst_53 = arith.constant dense<0.000000e+00> : vector<16xf32>
    %92 = vector.multi_reduction <add>, %91, %cst_53 [1] : vector<16x256xf32> to vector<16xf32>
    %93 = vector.shape_cast %92 : vector<16xf32> to vector<16x1xf32>
    %94 = arith.addf %1, %93 : vector<16x1xf32>
    %cst_54 = arith.constant dense<0.000000e+00> : vector<16xf32>
    %95 = vector.multi_reduction <add>, %66, %cst_54 [1] : vector<16x256xf32> to vector<16xf32>
    %96 = vector.shape_cast %95 : vector<16xf32> to vector<16x1xf32>
    %97 = arith.addf %2, %96 : vector<16x1xf32>
    %98 = arith.mulf %66, %66 : vector<16x256xf32>
    %cst_55 = arith.constant dense<0.000000e+00> : vector<16xf32>
    %99 = vector.multi_reduction <add>, %98, %cst_55 [1] : vector<16x256xf32> to vector<16xf32>
    %100 = vector.shape_cast %99 : vector<16xf32> to vector<16x1xf32>
    %101 = arith.addf %3, %100 : vector<16x1xf32>
    %cst_56 = arith.constant dense<0.000000e+00> : vector<16xf32>
    %102 = vector.multi_reduction <add>, %70, %cst_56 [1] : vector<16x256xf32> to vector<16xf32>
    %103 = vector.shape_cast %102 : vector<16xf32> to vector<16x1xf32>
    %104 = arith.addf %90, %103 : vector<16x1xf32>
    %105 = arith.mulf %70, %70 : vector<16x256xf32>
    %cst_57 = arith.constant dense<0.000000e+00> : vector<16xf32>
    %106 = vector.multi_reduction <add>, %105, %cst_57 [1] : vector<16x256xf32> to vector<16xf32>
    %107 = vector.shape_cast %106 : vector<16xf32> to vector<16x1xf32>
    %108 = arith.addf %94, %107 : vector<16x1xf32>
    %cst_58 = arith.constant dense<0.000000e+00> : vector<16xf32>
    %109 = vector.multi_reduction <add>, %73, %cst_58 [1] : vector<16x256xf32> to vector<16xf32>
    %110 = vector.shape_cast %109 : vector<16xf32> to vector<16x1xf32>
    %111 = arith.addf %97, %110 : vector<16x1xf32>
    %112 = arith.mulf %73, %73 : vector<16x256xf32>
    %cst_59 = arith.constant dense<0.000000e+00> : vector<16xf32>
    %113 = vector.multi_reduction <add>, %112, %cst_59 [1] : vector<16x256xf32> to vector<16xf32>
    %114 = vector.shape_cast %113 : vector<16xf32> to vector<16x1xf32>
    %115 = arith.addf %101, %114 : vector<16x1xf32>
    %cst_60 = arith.constant dense<0.000000e+00> : vector<16xf32>
    %116 = vector.multi_reduction <add>, %77, %cst_60 [1] : vector<16x256xf32> to vector<16xf32>
    %117 = vector.shape_cast %116 : vector<16xf32> to vector<16x1xf32>
    %118 = arith.addf %104, %117 : vector<16x1xf32>
    %119 = arith.mulf %77, %77 : vector<16x256xf32>
    %cst_61 = arith.constant dense<0.000000e+00> : vector<16xf32>
    %120 = vector.multi_reduction <add>, %119, %cst_61 [1] : vector<16x256xf32> to vector<16xf32>
    %121 = vector.shape_cast %120 : vector<16xf32> to vector<16x1xf32>
    %122 = arith.addf %108, %121 : vector<16x1xf32>
    %cst_62 = arith.constant dense<0.000000e+00> : vector<16xf32>
    %123 = vector.multi_reduction <add>, %80, %cst_62 [1] : vector<16x256xf32> to vector<16xf32>
    %124 = vector.shape_cast %123 : vector<16xf32> to vector<16x1xf32>
    %125 = arith.addf %111, %124 : vector<16x1xf32>
    %126 = arith.mulf %80, %80 : vector<16x256xf32>
    %cst_63 = arith.constant dense<0.000000e+00> : vector<16xf32>
    %127 = vector.multi_reduction <add>, %126, %cst_63 [1] : vector<16x256xf32> to vector<16xf32>
    %128 = vector.shape_cast %127 : vector<16xf32> to vector<16x1xf32>
    %129 = arith.addf %115, %128 : vector<16x1xf32>
    %cst_64 = arith.constant dense<0.000000e+00> : vector<16xf32>
    %130 = vector.multi_reduction <add>, %84, %cst_64 [1] : vector<16x256xf32> to vector<16xf32>
    %131 = vector.shape_cast %130 : vector<16xf32> to vector<16x1xf32>
    %132 = arith.addf %118, %131 : vector<16x1xf32>
    %133 = arith.mulf %84, %84 : vector<16x256xf32>
    %cst_65 = arith.constant dense<0.000000e+00> : vector<16xf32>
    %134 = vector.multi_reduction <add>, %133, %cst_65 [1] : vector<16x256xf32> to vector<16xf32>
    %135 = vector.shape_cast %134 : vector<16xf32> to vector<16x1xf32>
    %136 = arith.addf %122, %135 : vector<16x1xf32>
    %cst_66 = arith.constant dense<0.000000e+00> : vector<16xf32>
    %137 = vector.multi_reduction <add>, %87, %cst_66 [1] : vector<16x256xf32> to vector<16xf32>
    %138 = vector.shape_cast %137 : vector<16xf32> to vector<16x1xf32>
    %139 = arith.addf %125, %138 : vector<16x1xf32>
    %140 = arith.mulf %87, %87 : vector<16x256xf32>
    %cst_67 = arith.constant dense<0.000000e+00> : vector<16xf32>
    %141 = vector.multi_reduction <add>, %140, %cst_67 [1] : vector<16x256xf32> to vector<16xf32>
    %142 = vector.shape_cast %141 : vector<16xf32> to vector<16x1xf32>
    %143 = arith.addf %129, %142 : vector<16x1xf32>
    %144 = tpu.concatenate %132, %139 in 0 : vector<16x1xf32>, vector<16x1xf32> -> vector<32x1xf32>
    %c0_68 = arith.constant 0 : index
    %c0_69 = arith.constant 0 : index
    %c0_70 = arith.constant 0 : index
    %145 = vector.load %arg6[%c0_68, %c0_69, %c0_70] : memref<1x32x1xf32, #tpu.memory_space<vmem>>, vector<1x32x1xf32>
    %146 = vector.shape_cast %145 : vector<1x32x1xf32> to vector<32x1xf32>
    %147 = vector.shape_cast %144 : vector<32x1xf32> to vector<1x32x1xf32>
    tpu.vector_store %arg6[%c0_68, %c0_69, %c0_70], %147 {strides = array<i32>} : memref<1x32x1xf32, #tpu.memory_space<vmem>>, vector<1x32x1xf32>,
    %148 = tpu.concatenate %136, %143 in 0 : vector<16x1xf32>, vector<16x1xf32> -> vector<32x1xf32>
    %c0_71 = arith.constant 0 : index
    %c0_72 = arith.constant 0 : index
    %c0_73 = arith.constant 0 : index
    %149 = vector.load %arg7[%c0_71, %c0_72, %c0_73] : memref<1x32x1xf32, #tpu.memory_space<vmem>>, vector<1x32x1xf32>
    %150 = vector.shape_cast %149 : vector<1x32x1xf32> to vector<32x1xf32>
    %151 = vector.shape_cast %148 : vector<32x1xf32> to vector<1x32x1xf32>
    tpu.vector_store %arg7[%c0_71, %c0_72, %c0_73], %151 {strides = array<i32>} : memref<1x32x1xf32, #tpu.memory_space<vmem>>, vector<1x32x1xf32>,
    return
  }
  func.func @transform_0(%arg0: i32, %arg1: memref<2x8xi32, #tpu.memory_space<smem>>) -> (i32, i32, i32, i32) {
    %c0_i32 = arith.constant 0 : i32
    %c0_i32_0 = arith.constant 0 : i32
    %c0_i32_1 = arith.constant 0 : i32
    %c0_i32_2 = arith.constant 0 : i32
    return %arg0, %c0_i32, %c0_i32_0, %c0_i32_1 : i32, i32, i32, i32
  }
  func.func @transform_1(%arg0: i32, %arg1: memref<2x8xi32, #tpu.memory_space<smem>>) -> (i32, i32, i32, i32) {
    %c0_i32 = arith.constant 0 : i32
    %c0_i32_0 = arith.constant 0 : i32
    %c0_i32_1 = arith.constant 0 : i32
    %c0_i32_2 = arith.constant 0 : i32
    return %arg0, %c0_i32, %c0_i32_0, %c0_i32_1 : i32, i32, i32, i32
  }
  func.func @transform_2(%arg0: i32, %arg1: memref<2x8xi32, #tpu.memory_space<smem>>) -> (i32, i32) {
    %c0_i32 = arith.constant 0 : i32
    %c0_i32_0 = arith.constant 0 : i32
    %c0_i32_1 = arith.constant 0 : i32
    return %c0_i32, %c0_i32_0 : i32, i32
  }
  func.func @transform_3(%arg0: i32, %arg1: memref<2x8xi32, #tpu.memory_space<smem>>) -> (i32, i32) {
    %c0_i32 = arith.constant 0 : i32
    %c0_i32_0 = arith.constant 0 : i32
    %c0_i32_1 = arith.constant 0 : i32
    return %c0_i32, %c0_i32_0 : i32, i32
  }
  func.func @transform_4(%arg0: i32, %arg1: memref<2x8xi32, #tpu.memory_space<smem>>) -> (i32, i32, i32) {
    %c0_i32 = arith.constant 0 : i32
    %c0_i32_0 = arith.constant 0 : i32
    %c0_i32_1 = arith.constant 0 : i32
    return %arg0, %c0_i32, %c0_i32_0 : i32, i32, i32
  }
  func.func @transform_5(%arg0: i32, %arg1: memref<2x8xi32, #tpu.memory_space<smem>>) -> (i32, i32, i32) {
    %c0_i32 = arith.constant 0 : i32
    %c0_i32_0 = arith.constant 0 : i32
    %c0_i32_1 = arith.constant 0 : i32
    return %arg0, %c0_i32, %c0_i32_0 : i32, i32, i32
  }
}

module attributes {stable_mosaic.version = 11 : i64} {
  func.func @out_kernel(%arg0: i32, %arg1: memref<2x8xi32, #tpu.memory_space<smem>>, %arg2: memref<1x4x4x8xf32, #tpu.memory_space<vmem>>, %arg3: memref<1x4x4x256xf32, #tpu.memory_space<vmem>>, %arg4: memref<16x4xf32, #tpu.memory_space<vmem>>, %arg5: memref<16x4xf32, #tpu.memory_space<vmem>>, %arg6: memref<32x1xf32, #tpu.memory_space<vmem>>, %arg7: memref<32x1xf32, #tpu.memory_space<vmem>>, %arg8: memref<1x4x32x256xf32, #tpu.memory_space<vmem>>) attributes {dimension_semantics = [#tpu.dimension_semantics<parallel>], iteration_bounds = array<i64: 2>, scalar_prefetch = 1 : i64, scratch_operands = 0 : i64, tpu.core_type = #tpu.core_type<tc>, window_params = [{transform_indices = @transform_0, window_bounds = array<i64: 1, 4, 4, 8>}, {transform_indices = @transform_1, window_bounds = array<i64: 1, 4, 4, 256>}, {pipeline_mode = #tpu.pipeline_mode<synchronous>, transform_indices = @transform_2, window_bounds = array<i64: 16, 4>}, {pipeline_mode = #tpu.pipeline_mode<synchronous>, transform_indices = @transform_3, window_bounds = array<i64: 16, 4>}, {pipeline_mode = #tpu.pipeline_mode<synchronous>, transform_indices = @transform_4, window_bounds = array<i64: 32, 1>}, {pipeline_mode = #tpu.pipeline_mode<synchronous>, transform_indices = @transform_5, window_bounds = array<i64: 32, 1>}, {transform_indices = @transform_6, window_bounds = array<i64: 1, 4, 32, 256>}]} {
    %c0 = arith.constant 0 : index
    %c0_0 = arith.constant 0 : index
    %0 = vector.load %arg6[%c0, %c0_0] : memref<32x1xf32, #tpu.memory_space<vmem>>, vector<16x1xf32>
    %c0_1 = arith.constant 0 : index
    %c0_2 = arith.constant 0 : index
    %1 = vector.load %arg7[%c0_1, %c0_2] : memref<32x1xf32, #tpu.memory_space<vmem>>, vector<16x1xf32>
    %c16 = arith.constant 16 : index
    %c0_3 = arith.constant 0 : index
    %2 = vector.load %arg6[%c16, %c0_3] : memref<32x1xf32, #tpu.memory_space<vmem>>, vector<16x1xf32>
    %c16_4 = arith.constant 16 : index
    %c0_5 = arith.constant 0 : index
    %3 = vector.load %arg7[%c16_4, %c0_5] : memref<32x1xf32, #tpu.memory_space<vmem>>, vector<16x1xf32>
    %4 = tpu.iota {dimensions = array<i32: 1>} : vector<8x256xi32>
    %5 = tpu.iota {dimensions = array<i32: 0>} : vector<8x256xi32>
    %c0_i32 = arith.constant 0 : i32
    %6 = vector.broadcast %c0_i32 : i32 to vector<8x256xi32>
    %c0_i32_6 = arith.constant 0 : i32
    %7 = vector.broadcast %c0_i32_6 : i32 to vector<8x256xi32>
    %8 = arith.cmpi eq, %5, %7 : vector<8x256xi32>
    %9 = arith.index_cast %arg0 : i32 to index
    %c0_7 = arith.constant 0 : index
    %10 = memref.load %arg1[%9, %c0_7] : memref<2x8xi32, #tpu.memory_space<smem>>
    %11 = vector.broadcast %10 : i32 to vector<8x256xi32>
    %12 = arith.select %8, %11, %6 : vector<8x256xi1>, vector<8x256xi32>
    %c1_i32 = arith.constant 1 : i32
    %13 = vector.broadcast %c1_i32 : i32 to vector<8x256xi32>
    %14 = arith.cmpi eq, %5, %13 : vector<8x256xi32>
    %15 = arith.index_cast %arg0 : i32 to index
    %c1 = arith.constant 1 : index
    %16 = memref.load %arg1[%15, %c1] : memref<2x8xi32, #tpu.memory_space<smem>>
    %17 = vector.broadcast %16 : i32 to vector<8x256xi32>
    %18 = arith.select %14, %17, %12 : vector<8x256xi1>, vector<8x256xi32>
    %c2_i32 = arith.constant 2 : i32
    %19 = vector.broadcast %c2_i32 : i32 to vector<8x256xi32>
    %20 = arith.cmpi eq, %5, %19 : vector<8x256xi32>
    %21 = arith.index_cast %arg0 : i32 to index
    %c2 = arith.constant 2 : index
    %22 = memref.load %arg1[%21, %c2] : memref<2x8xi32, #tpu.memory_space<smem>>
    %23 = vector.broadcast %22 : i32 to vector<8x256xi32>
    %24 = arith.select %20, %23, %18 : vector<8x256xi1>, vector<8x256xi32>
    %c3_i32 = arith.constant 3 : i32
    %25 = vector.broadcast %c3_i32 : i32 to vector<8x256xi32>
    %26 = arith.cmpi eq, %5, %25 : vector<8x256xi32>
    %27 = arith.index_cast %arg0 : i32 to index
    %c3 = arith.constant 3 : index
    %28 = memref.load %arg1[%27, %c3] : memref<2x8xi32, #tpu.memory_space<smem>>
    %29 = vector.broadcast %28 : i32 to vector<8x256xi32>
    %30 = arith.select %26, %29, %24 : vector<8x256xi1>, vector<8x256xi32>
    %c4_i32 = arith.constant 4 : i32
    %31 = vector.broadcast %c4_i32 : i32 to vector<8x256xi32>
    %32 = arith.cmpi eq, %5, %31 : vector<8x256xi32>
    %33 = arith.index_cast %arg0 : i32 to index
    %c4 = arith.constant 4 : index
    %34 = memref.load %arg1[%33, %c4] : memref<2x8xi32, #tpu.memory_space<smem>>
    %35 = vector.broadcast %34 : i32 to vector<8x256xi32>
    %36 = arith.select %32, %35, %30 : vector<8x256xi1>, vector<8x256xi32>
    %c5_i32 = arith.constant 5 : i32
    %37 = vector.broadcast %c5_i32 : i32 to vector<8x256xi32>
    %38 = arith.cmpi eq, %5, %37 : vector<8x256xi32>
    %39 = arith.index_cast %arg0 : i32 to index
    %c5 = arith.constant 5 : index
    %40 = memref.load %arg1[%39, %c5] : memref<2x8xi32, #tpu.memory_space<smem>>
    %41 = vector.broadcast %40 : i32 to vector<8x256xi32>
    %42 = arith.select %38, %41, %36 : vector<8x256xi1>, vector<8x256xi32>
    %c6_i32 = arith.constant 6 : i32
    %43 = vector.broadcast %c6_i32 : i32 to vector<8x256xi32>
    %44 = arith.cmpi eq, %5, %43 : vector<8x256xi32>
    %45 = arith.index_cast %arg0 : i32 to index
    %c6 = arith.constant 6 : index
    %46 = memref.load %arg1[%45, %c6] : memref<2x8xi32, #tpu.memory_space<smem>>
    %47 = vector.broadcast %46 : i32 to vector<8x256xi32>
    %48 = arith.select %44, %47, %42 : vector<8x256xi1>, vector<8x256xi32>
    %c7_i32 = arith.constant 7 : i32
    %49 = vector.broadcast %c7_i32 : i32 to vector<8x256xi32>
    %50 = arith.cmpi eq, %5, %49 : vector<8x256xi32>
    %51 = arith.index_cast %arg0 : i32 to index
    %c7 = arith.constant 7 : index
    %52 = memref.load %arg1[%51, %c7] : memref<2x8xi32, #tpu.memory_space<smem>>
    %53 = vector.broadcast %52 : i32 to vector<8x256xi32>
    %54 = arith.select %50, %53, %48 : vector<8x256xi1>, vector<8x256xi32>
    %55 = arith.cmpi eq, %4, %54 : vector<8x256xi32>
    %56 = arith.extui %55 : vector<8x256xi1> to vector<8x256xi32>
    %57 = arith.sitofp %56 : vector<8x256xi32> to vector<8x256xf32>
    %c0_8 = arith.constant 0 : index
    %c0_9 = arith.constant 0 : index
    %58 = vector.load %arg4[%c0_8, %c0_9] : memref<16x4xf32, #tpu.memory_space<vmem>>, vector<16x4xf32>
    %c0_10 = arith.constant 0 : index
    %c0_11 = arith.constant 0 : index
    %59 = vector.load %arg5[%c0_10, %c0_11] : memref<16x4xf32, #tpu.memory_space<vmem>>, vector<16x4xf32>
    %c0_12 = arith.constant 0 : index
    %c0_13 = arith.constant 0 : index
    %c0_14 = arith.constant 0 : index
    %c0_15 = arith.constant 0 : index
    %60 = vector.load %arg2[%c0_12, %c0_13, %c0_14, %c0_15] : memref<1x4x4x8xf32, #tpu.memory_space<vmem>>, vector<1x1x4x8xf32>
    %61 = vector.shape_cast %60 : vector<1x1x4x8xf32> to vector<4x8xf32>
    %cst = arith.constant dense<0.000000e+00> : vector<4x256xf32>
    %62 = tpu.matmul %61, %57, %cst {dimension_numbers = #tpu.dot_dimension_numbers<[1], [0], [0], [1], [0, 0, 1, 1], [], []>} : vector<4x8xf32>, vector<8x256xf32>, vector<4x256xf32> -> vector<4x256xf32>
    %cst_16 = arith.constant dense<0.000000e+00> : vector<16x256xf32>
    %63 = tpu.matmul %58, %62, %cst_16 {dimension_numbers = #tpu.dot_dimension_numbers<[1], [0], [0], [1], [0, 0, 1, 1], [], []>} : vector<16x4xf32>, vector<4x256xf32>, vector<16x256xf32> -> vector<16x256xf32>
    %c0_17 = arith.constant 0 : index
    %c0_18 = arith.constant 0 : index
    %c0_19 = arith.constant 0 : index
    %c0_20 = arith.constant 0 : index
    %64 = vector.load %arg3[%c0_17, %c0_18, %c0_19, %c0_20] : memref<1x4x4x256xf32, #tpu.memory_space<vmem>>, vector<1x1x4x256xf32>
    %65 = vector.shape_cast %64 : vector<1x1x4x256xf32> to vector<4x256xf32>
    %cst_21 = arith.constant dense<0.000000e+00> : vector<16x256xf32>
    %66 = tpu.matmul %59, %65, %cst_21 {dimension_numbers = #tpu.dot_dimension_numbers<[1], [0], [0], [1], [0, 0, 1, 1], [], []>} : vector<16x4xf32>, vector<4x256xf32>, vector<16x256xf32> -> vector<16x256xf32>
    %c0_22 = arith.constant 0 : index
    %c1_23 = arith.constant 1 : index
    %c0_24 = arith.constant 0 : index
    %c0_25 = arith.constant 0 : index
    %67 = vector.load %arg2[%c0_22, %c1_23, %c0_24, %c0_25] : memref<1x4x4x8xf32, #tpu.memory_space<vmem>>, vector<1x1x4x8xf32>
    %68 = vector.shape_cast %67 : vector<1x1x4x8xf32> to vector<4x8xf32>
    %cst_26 = arith.constant dense<0.000000e+00> : vector<4x256xf32>
    %69 = tpu.matmul %68, %57, %cst_26 {dimension_numbers = #tpu.dot_dimension_numbers<[1], [0], [0], [1], [0, 0, 1, 1], [], []>} : vector<4x8xf32>, vector<8x256xf32>, vector<4x256xf32> -> vector<4x256xf32>
    %cst_27 = arith.constant dense<0.000000e+00> : vector<16x256xf32>
    %70 = tpu.matmul %58, %69, %cst_27 {dimension_numbers = #tpu.dot_dimension_numbers<[1], [0], [0], [1], [0, 0, 1, 1], [], []>} : vector<16x4xf32>, vector<4x256xf32>, vector<16x256xf32> -> vector<16x256xf32>
    %c0_28 = arith.constant 0 : index
    %c1_29 = arith.constant 1 : index
    %c0_30 = arith.constant 0 : index
    %c0_31 = arith.constant 0 : index
    %71 = vector.load %arg3[%c0_28, %c1_29, %c0_30, %c0_31] : memref<1x4x4x256xf32, #tpu.memory_space<vmem>>, vector<1x1x4x256xf32>
    %72 = vector.shape_cast %71 : vector<1x1x4x256xf32> to vector<4x256xf32>
    %cst_32 = arith.constant dense<0.000000e+00> : vector<16x256xf32>
    %73 = tpu.matmul %59, %72, %cst_32 {dimension_numbers = #tpu.dot_dimension_numbers<[1], [0], [0], [1], [0, 0, 1, 1], [], []>} : vector<16x4xf32>, vector<4x256xf32>, vector<16x256xf32> -> vector<16x256xf32>
    %c0_33 = arith.constant 0 : index
    %c2_34 = arith.constant 2 : index
    %c0_35 = arith.constant 0 : index
    %c0_36 = arith.constant 0 : index
    %74 = vector.load %arg2[%c0_33, %c2_34, %c0_35, %c0_36] : memref<1x4x4x8xf32, #tpu.memory_space<vmem>>, vector<1x1x4x8xf32>
    %75 = vector.shape_cast %74 : vector<1x1x4x8xf32> to vector<4x8xf32>
    %cst_37 = arith.constant dense<0.000000e+00> : vector<4x256xf32>
    %76 = tpu.matmul %75, %57, %cst_37 {dimension_numbers = #tpu.dot_dimension_numbers<[1], [0], [0], [1], [0, 0, 1, 1], [], []>} : vector<4x8xf32>, vector<8x256xf32>, vector<4x256xf32> -> vector<4x256xf32>
    %cst_38 = arith.constant dense<0.000000e+00> : vector<16x256xf32>
    %77 = tpu.matmul %58, %76, %cst_38 {dimension_numbers = #tpu.dot_dimension_numbers<[1], [0], [0], [1], [0, 0, 1, 1], [], []>} : vector<16x4xf32>, vector<4x256xf32>, vector<16x256xf32> -> vector<16x256xf32>
    %c0_39 = arith.constant 0 : index
    %c2_40 = arith.constant 2 : index
    %c0_41 = arith.constant 0 : index
    %c0_42 = arith.constant 0 : index
    %78 = vector.load %arg3[%c0_39, %c2_40, %c0_41, %c0_42] : memref<1x4x4x256xf32, #tpu.memory_space<vmem>>, vector<1x1x4x256xf32>
    %79 = vector.shape_cast %78 : vector<1x1x4x256xf32> to vector<4x256xf32>
    %cst_43 = arith.constant dense<0.000000e+00> : vector<16x256xf32>
    %80 = tpu.matmul %59, %79, %cst_43 {dimension_numbers = #tpu.dot_dimension_numbers<[1], [0], [0], [1], [0, 0, 1, 1], [], []>} : vector<16x4xf32>, vector<4x256xf32>, vector<16x256xf32> -> vector<16x256xf32>
    %c0_44 = arith.constant 0 : index
    %c3_45 = arith.constant 3 : index
    %c0_46 = arith.constant 0 : index
    %c0_47 = arith.constant 0 : index
    %81 = vector.load %arg2[%c0_44, %c3_45, %c0_46, %c0_47] : memref<1x4x4x8xf32, #tpu.memory_space<vmem>>, vector<1x1x4x8xf32>
    %82 = vector.shape_cast %81 : vector<1x1x4x8xf32> to vector<4x8xf32>
    %cst_48 = arith.constant dense<0.000000e+00> : vector<4x256xf32>
    %83 = tpu.matmul %82, %57, %cst_48 {dimension_numbers = #tpu.dot_dimension_numbers<[1], [0], [0], [1], [0, 0, 1, 1], [], []>} : vector<4x8xf32>, vector<8x256xf32>, vector<4x256xf32> -> vector<4x256xf32>
    %cst_49 = arith.constant dense<0.000000e+00> : vector<16x256xf32>
    %84 = tpu.matmul %58, %83, %cst_49 {dimension_numbers = #tpu.dot_dimension_numbers<[1], [0], [0], [1], [0, 0, 1, 1], [], []>} : vector<16x4xf32>, vector<4x256xf32>, vector<16x256xf32> -> vector<16x256xf32>
    %c0_50 = arith.constant 0 : index
    %c3_51 = arith.constant 3 : index
    %c0_52 = arith.constant 0 : index
    %c0_53 = arith.constant 0 : index
    %85 = vector.load %arg3[%c0_50, %c3_51, %c0_52, %c0_53] : memref<1x4x4x256xf32, #tpu.memory_space<vmem>>, vector<1x1x4x256xf32>
    %86 = vector.shape_cast %85 : vector<1x1x4x256xf32> to vector<4x256xf32>
    %cst_54 = arith.constant dense<0.000000e+00> : vector<16x256xf32>
    %87 = tpu.matmul %59, %86, %cst_54 {dimension_numbers = #tpu.dot_dimension_numbers<[1], [0], [0], [1], [0, 0, 1, 1], [], []>} : vector<16x4xf32>, vector<4x256xf32>, vector<16x256xf32> -> vector<16x256xf32>
    %88 = vector.broadcast %0 : vector<16x1xf32> to vector<16x256xf32>
    %89 = arith.mulf %63, %88 : vector<16x256xf32>
    %90 = vector.broadcast %1 : vector<16x1xf32> to vector<16x256xf32>
    %91 = arith.addf %89, %90 : vector<16x256xf32>
    %c0_55 = arith.constant 0 : index
    %c0_56 = arith.constant 0 : index
    %c0_57 = arith.constant 0 : index
    %c0_58 = arith.constant 0 : index
    %92 = vector.load %arg8[%c0_55, %c0_56, %c0_57, %c0_58] : memref<1x4x32x256xf32, #tpu.memory_space<vmem>>, vector<1x1x16x256xf32>
    %93 = vector.shape_cast %92 : vector<1x1x16x256xf32> to vector<16x256xf32>
    %94 = vector.shape_cast %91 : vector<16x256xf32> to vector<1x1x16x256xf32>
    tpu.vector_store %arg8[%c0_55, %c0_56, %c0_57, %c0_58], %94 {strides = array<i32>} : memref<1x4x32x256xf32, #tpu.memory_space<vmem>>, vector<1x1x16x256xf32>,
    %95 = vector.broadcast %2 : vector<16x1xf32> to vector<16x256xf32>
    %96 = arith.mulf %66, %95 : vector<16x256xf32>
    %97 = vector.broadcast %3 : vector<16x1xf32> to vector<16x256xf32>
    %98 = arith.addf %96, %97 : vector<16x256xf32>
    %c0_59 = arith.constant 0 : index
    %c0_60 = arith.constant 0 : index
    %c16_61 = arith.constant 16 : index
    %c0_62 = arith.constant 0 : index
    %99 = vector.load %arg8[%c0_59, %c0_60, %c16_61, %c0_62] : memref<1x4x32x256xf32, #tpu.memory_space<vmem>>, vector<1x1x16x256xf32>
    %100 = vector.shape_cast %99 : vector<1x1x16x256xf32> to vector<16x256xf32>
    %101 = vector.shape_cast %98 : vector<16x256xf32> to vector<1x1x16x256xf32>
    tpu.vector_store %arg8[%c0_59, %c0_60, %c16_61, %c0_62], %101 {strides = array<i32>} : memref<1x4x32x256xf32, #tpu.memory_space<vmem>>, vector<1x1x16x256xf32>,
    %102 = vector.broadcast %0 : vector<16x1xf32> to vector<16x256xf32>
    %103 = arith.mulf %70, %102 : vector<16x256xf32>
    %104 = vector.broadcast %1 : vector<16x1xf32> to vector<16x256xf32>
    %105 = arith.addf %103, %104 : vector<16x256xf32>
    %c0_63 = arith.constant 0 : index
    %c1_64 = arith.constant 1 : index
    %c0_65 = arith.constant 0 : index
    %c0_66 = arith.constant 0 : index
    %106 = vector.load %arg8[%c0_63, %c1_64, %c0_65, %c0_66] : memref<1x4x32x256xf32, #tpu.memory_space<vmem>>, vector<1x1x16x256xf32>
    %107 = vector.shape_cast %106 : vector<1x1x16x256xf32> to vector<16x256xf32>
    %108 = vector.shape_cast %105 : vector<16x256xf32> to vector<1x1x16x256xf32>
    tpu.vector_store %arg8[%c0_63, %c1_64, %c0_65, %c0_66], %108 {strides = array<i32>} : memref<1x4x32x256xf32, #tpu.memory_space<vmem>>, vector<1x1x16x256xf32>,
    %109 = vector.broadcast %2 : vector<16x1xf32> to vector<16x256xf32>
    %110 = arith.mulf %73, %109 : vector<16x256xf32>
    %111 = vector.broadcast %3 : vector<16x1xf32> to vector<16x256xf32>
    %112 = arith.addf %110, %111 : vector<16x256xf32>
    %c0_67 = arith.constant 0 : index
    %c1_68 = arith.constant 1 : index
    %c16_69 = arith.constant 16 : index
    %c0_70 = arith.constant 0 : index
    %113 = vector.load %arg8[%c0_67, %c1_68, %c16_69, %c0_70] : memref<1x4x32x256xf32, #tpu.memory_space<vmem>>, vector<1x1x16x256xf32>
    %114 = vector.shape_cast %113 : vector<1x1x16x256xf32> to vector<16x256xf32>
    %115 = vector.shape_cast %112 : vector<16x256xf32> to vector<1x1x16x256xf32>
    tpu.vector_store %arg8[%c0_67, %c1_68, %c16_69, %c0_70], %115 {strides = array<i32>} : memref<1x4x32x256xf32, #tpu.memory_space<vmem>>, vector<1x1x16x256xf32>,
    %116 = vector.broadcast %0 : vector<16x1xf32> to vector<16x256xf32>
    %117 = arith.mulf %77, %116 : vector<16x256xf32>
    %118 = vector.broadcast %1 : vector<16x1xf32> to vector<16x256xf32>
    %119 = arith.addf %117, %118 : vector<16x256xf32>
    %c0_71 = arith.constant 0 : index
    %c2_72 = arith.constant 2 : index
    %c0_73 = arith.constant 0 : index
    %c0_74 = arith.constant 0 : index
    %120 = vector.load %arg8[%c0_71, %c2_72, %c0_73, %c0_74] : memref<1x4x32x256xf32, #tpu.memory_space<vmem>>, vector<1x1x16x256xf32>
    %121 = vector.shape_cast %120 : vector<1x1x16x256xf32> to vector<16x256xf32>
    %122 = vector.shape_cast %119 : vector<16x256xf32> to vector<1x1x16x256xf32>
    tpu.vector_store %arg8[%c0_71, %c2_72, %c0_73, %c0_74], %122 {strides = array<i32>} : memref<1x4x32x256xf32, #tpu.memory_space<vmem>>, vector<1x1x16x256xf32>,
    %123 = vector.broadcast %2 : vector<16x1xf32> to vector<16x256xf32>
    %124 = arith.mulf %80, %123 : vector<16x256xf32>
    %125 = vector.broadcast %3 : vector<16x1xf32> to vector<16x256xf32>
    %126 = arith.addf %124, %125 : vector<16x256xf32>
    %c0_75 = arith.constant 0 : index
    %c2_76 = arith.constant 2 : index
    %c16_77 = arith.constant 16 : index
    %c0_78 = arith.constant 0 : index
    %127 = vector.load %arg8[%c0_75, %c2_76, %c16_77, %c0_78] : memref<1x4x32x256xf32, #tpu.memory_space<vmem>>, vector<1x1x16x256xf32>
    %128 = vector.shape_cast %127 : vector<1x1x16x256xf32> to vector<16x256xf32>
    %129 = vector.shape_cast %126 : vector<16x256xf32> to vector<1x1x16x256xf32>
    tpu.vector_store %arg8[%c0_75, %c2_76, %c16_77, %c0_78], %129 {strides = array<i32>} : memref<1x4x32x256xf32, #tpu.memory_space<vmem>>, vector<1x1x16x256xf32>,
    %130 = vector.broadcast %0 : vector<16x1xf32> to vector<16x256xf32>
    %131 = arith.mulf %84, %130 : vector<16x256xf32>
    %132 = vector.broadcast %1 : vector<16x1xf32> to vector<16x256xf32>
    %133 = arith.addf %131, %132 : vector<16x256xf32>
    %c0_79 = arith.constant 0 : index
    %c3_80 = arith.constant 3 : index
    %c0_81 = arith.constant 0 : index
    %c0_82 = arith.constant 0 : index
    %134 = vector.load %arg8[%c0_79, %c3_80, %c0_81, %c0_82] : memref<1x4x32x256xf32, #tpu.memory_space<vmem>>, vector<1x1x16x256xf32>
    %135 = vector.shape_cast %134 : vector<1x1x16x256xf32> to vector<16x256xf32>
    %136 = vector.shape_cast %133 : vector<16x256xf32> to vector<1x1x16x256xf32>
    tpu.vector_store %arg8[%c0_79, %c3_80, %c0_81, %c0_82], %136 {strides = array<i32>} : memref<1x4x32x256xf32, #tpu.memory_space<vmem>>, vector<1x1x16x256xf32>,
    %137 = vector.broadcast %2 : vector<16x1xf32> to vector<16x256xf32>
    %138 = arith.mulf %87, %137 : vector<16x256xf32>
    %139 = vector.broadcast %3 : vector<16x1xf32> to vector<16x256xf32>
    %140 = arith.addf %138, %139 : vector<16x256xf32>
    %c0_83 = arith.constant 0 : index
    %c3_84 = arith.constant 3 : index
    %c16_85 = arith.constant 16 : index
    %c0_86 = arith.constant 0 : index
    %141 = vector.load %arg8[%c0_83, %c3_84, %c16_85, %c0_86] : memref<1x4x32x256xf32, #tpu.memory_space<vmem>>, vector<1x1x16x256xf32>
    %142 = vector.shape_cast %141 : vector<1x1x16x256xf32> to vector<16x256xf32>
    %143 = vector.shape_cast %140 : vector<16x256xf32> to vector<1x1x16x256xf32>
    tpu.vector_store %arg8[%c0_83, %c3_84, %c16_85, %c0_86], %143 {strides = array<i32>} : memref<1x4x32x256xf32, #tpu.memory_space<vmem>>, vector<1x1x16x256xf32>,
    return
  }
  func.func @transform_0(%arg0: i32, %arg1: memref<2x8xi32, #tpu.memory_space<smem>>) -> (i32, i32, i32, i32) {
    %c0_i32 = arith.constant 0 : i32
    %c0_i32_0 = arith.constant 0 : i32
    %c0_i32_1 = arith.constant 0 : i32
    %c0_i32_2 = arith.constant 0 : i32
    return %arg0, %c0_i32, %c0_i32_0, %c0_i32_1 : i32, i32, i32, i32
  }
  func.func @transform_1(%arg0: i32, %arg1: memref<2x8xi32, #tpu.memory_space<smem>>) -> (i32, i32, i32, i32) {
    %c0_i32 = arith.constant 0 : i32
    %c0_i32_0 = arith.constant 0 : i32
    %c0_i32_1 = arith.constant 0 : i32
    %c0_i32_2 = arith.constant 0 : i32
    return %arg0, %c0_i32, %c0_i32_0, %c0_i32_1 : i32, i32, i32, i32
  }
  func.func @transform_2(%arg0: i32, %arg1: memref<2x8xi32, #tpu.memory_space<smem>>) -> (i32, i32) {
    %c0_i32 = arith.constant 0 : i32
    %c0_i32_0 = arith.constant 0 : i32
    %c0_i32_1 = arith.constant 0 : i32
    return %c0_i32, %c0_i32_0 : i32, i32
  }
  func.func @transform_3(%arg0: i32, %arg1: memref<2x8xi32, #tpu.memory_space<smem>>) -> (i32, i32) {
    %c0_i32 = arith.constant 0 : i32
    %c0_i32_0 = arith.constant 0 : i32
    %c0_i32_1 = arith.constant 0 : i32
    return %c0_i32, %c0_i32_0 : i32, i32
  }
  func.func @transform_4(%arg0: i32, %arg1: memref<2x8xi32, #tpu.memory_space<smem>>) -> (i32, i32) {
    %c0_i32 = arith.constant 0 : i32
    %c0_i32_0 = arith.constant 0 : i32
    %c0_i32_1 = arith.constant 0 : i32
    return %c0_i32, %c0_i32_0 : i32, i32
  }
  func.func @transform_5(%arg0: i32, %arg1: memref<2x8xi32, #tpu.memory_space<smem>>) -> (i32, i32) {
    %c0_i32 = arith.constant 0 : i32
    %c0_i32_0 = arith.constant 0 : i32
    %c0_i32_1 = arith.constant 0 : i32
    return %c0_i32, %c0_i32_0 : i32, i32
  }
  func.func @transform_6(%arg0: i32, %arg1: memref<2x8xi32, #tpu.memory_space<smem>>) -> (i32, i32, i32, i32) {
    %c0_i32 = arith.constant 0 : i32
    %c0_i32_0 = arith.constant 0 : i32
    %c0_i32_1 = arith.constant 0 : i32
    %c0_i32_2 = arith.constant 0 : i32
    return %arg0, %c0_i32, %c0_i32_0, %c0_i32_1 : i32, i32, i32, i32
  }
}

</mosaic_0001>

<bundles_post_ra>
// kernel: graph2grid_forward.2
= control target key start
LH: loop header
LB: loop body
LE: loop exit
PB: predicated region body
PF: predicated region fallthrough
CT: control target
= control target key end

     0   :  { %s1933_s0 = inlined_call_operand.vmem [shape: s32[2,8], index: 0, kind: input, shape index: {}]   ;;  %s1934_s1 = inlined_call_operand.vmem [shape: f32[2,4,4,8], index: 1, kind: input, shape index: {}]   ;;  %s1935_s2 = inlined_call_operand.vmem [shape: f32[2,4,4,256], index: 2, kind: input, shape index: {}]   ;;  %s1936_s3 = inlined_call_operand.vmem [shape: f32[16,4], index: 3, kind: input, shape index: {}]   ;;  %s1937_s4 = inlined_call_operand.vmem [shape: f32[16,4], index: 4, kind: input, shape index: {}]   ;;  %s1938_s5 = inlined_call_operand.vmem [shape: f32[2,32,1], index: 5, kind: output, shape index: {0}]   ;;  %s1939_s6 = inlined_call_operand.vmem [shape: f32[2,32,1], index: 6, kind: output, shape index: {1}]  }
   0x1   :  { %s12_s23 = sshll.u32 %s1933_s0, 4  ;;  %s13_s23 = int_to_ptr.vmem [resolvable:$true] %s12_s23 }
   0x2   :  { %s1665_s24 = scalar_lea.vmem %s13_s23, 32  ;;  %p1670_p1 = scmp.lt.s32.totalorder %s13_s23, %s13_s23 }
   0x3   :  { %p1666_p0 = scmp.ne.s32.totalorder %s13_s23, %s1665_s24  ;;  %p1671_p2 = scmp.lt.s32.totalorder %s1665_s24, %s1665_s24 }
   0x5   :  { %p1672_p3 = por %p1671_p2, %p1670_p1 }
   0x7   :  { %p1673_p4 = pnand %p1672_p3, %p1666_p0 }
   0x9   :  { %1676 = shalt.err (!%p1673_p4)  }
   0xa   :  { %s1687_s25 = smov [#allocation3]  }
   0xb   :  { %15 = dma.vmem_to_smem %s13_s23, 32, %s1687_s25, [#allocation2] }
   0xc   :  { %1681 = dma.done.wait [#allocation2], 32 }
   0xd   :  { %1682 = vsyncadd [#allocation2], 4294967264 }
   0xe   :  { %17 = sfence }
   0xf   :  { %s1728_s26 = smov 0  }
  0x10 LB: > { %s1734_s0 = sadd.s32 4294967295, %s1685_s26   ;;  %p1582_p5 = scmp.ge.s32.totalorder %s1685_s26, 1  ;;  %s1685_s26 = sphi %s1728_s26, %s23_s26  }
  0x11   : > { %p207_p6 = scmp.lt.s32.totalorder %s1685_s26, 3 }
  0x13   : > { %p208_p7 = pnand %p1582_p5, %p207_p6 }
  0x14   : > { %v265_v0 = vlaneseq (!%p208_p7)  ;;  %s1591_s27 = sshll.u32 (!%p208_p7), %s1734_s0, 7  ;;  %p245_p8 = scmp.lt.s32.totalorder (!%p208_p7), %s1734_s0, 1  ;;  %v1688_v1 = vmov (!%p208_p7), 0.0   ;;  %vm321_vm10 = vcmask (!%p208_p7), 64512   ;;  %vm403_vm11 = vcmask (!%p208_p7), 1043456   ;;  %v1786_v25 = vld [vmem:[%s1937_s4] sm:$0xff] (!%p208_p7) }
  0x15   : > { %211 = sbr.rel (%p208_p7) target bundleno = 1297 (0x511), region = 36  ;;  %s272_s28 = sld [smem:[#allocation3 + %s1591_s27]] (!%p208_p7)  ;;  %389 = vmatprep.mubr.f32.mxu0 (!%p208_p7), %v1688_v1  ;;  %474 = vmatprep.mubr.f32.mxu1 (!%p208_p7), %v1688_v1  ;;  %v1689_v24 = vmov (!%p208_p7), 1.0   ;;  %vm396_vm12 = vcmask (!%p208_p7), 31744   ;;  %v1794_v26 = vld [vmem:[%s1937_s4 + $0x8] sm:$0xff] (!%p208_p7)  ;;  %v1803_v30 = vld [vmem:[%s1936_s3] sm:$0xff] (!%p208_p7) }
  0x16   : > { %s276_s29 = sadd.s32 (!%p208_p7), 1, %s1591_s27  ;;  %v269_v2 = vshrl.u32 (!%p208_p7), %v265_v0, 7  ;;  %s281_s7 = sadd.s32 (!%p208_p7), 2, %s1591_s27  ;;  %v1742_v4 = vand.u32 (!%p208_p7), 127, %v265_v0  ;;  %v1817_v33 = vld [vmem:[%s1936_s3 + $0x8] sm:$0xff] (!%p208_p7)  ;;  %vm1469_vm13 = vcmask (!%p208_p7), 7168  }
  0x17   : > { %s277_s30 = sld [smem:[#allocation3 + %s276_s29]] (!%p208_p7)  ;;  %s286_s9 = sadd.s32 (!%p208_p7), 3, %s1591_s27 }
  0x18   : > { %s282_s8 = sld [smem:[#allocation3 + %s281_s7]] (!%p208_p7)  ;;  %s291_s11 = sadd.s32 (!%p208_p7), 4, %s1591_s27  ;;  %vm270_vm0 = vcmp.eq.s32.totalorder (!%p208_p7), %v269_v2, 0  ;;  %vm275_vm1 = vcmp.eq.s32.totalorder (!%p208_p7), %v269_v2, 1  ;;  %vm280_vm2 = vcmp.eq.s32.totalorder (!%p208_p7), %v269_v2, 2  ;;  %vm285_vm3 = vcmp.eq.s32.totalorder (!%p208_p7), %v269_v2, 3 }
  0x19   : > { %s287_s10 = sld [smem:[#allocation3 + %s286_s9]] (!%p208_p7)  ;;  %s296_s13 = sadd.s32 (!%p208_p7), 5, %s1591_s27  ;;  %vm290_vm4 = vcmp.eq.s32.totalorder (!%p208_p7), %v269_v2, 4  ;;  %vm295_vm5 = vcmp.eq.s32.totalorder (!%p208_p7), %v269_v2, 5  ;;  %vm300_vm6 = vcmp.eq.s32.totalorder (!%p208_p7), %v269_v2, 6  ;;  %v1750_v13 = vadd.s32 (!%p208_p7), 128, %v1742_v4 }
  0x1a   : > { %s292_s12 = sld [smem:[#allocation3 + %s291_s11]] (!%p208_p7)  ;;  %s301_s15 = sadd.s32 (!%p208_p7), 6, %s1591_s27  ;;  %vm305_vm7 = vcmp.eq.s32.totalorder (!%p208_p7), %v269_v2, 7 }
  0x1b   : > { %s297_s14 = sld [smem:[#allocation3 + %s296_s13]] (!%p208_p7)  ;;  %v273_v3 = vstv (!%p208_p7), %s272_s28  ;;  %s306_s17 = sadd.s32 (!%p208_p7), 7, %s1591_s27 }
  0x1c   : > { %s302_s16 = sld [smem:[#allocation3 + %s301_s15]]  ;;  %v274_v5 = vsel %vm270_vm0, %v273_v3, 0  ;;  %s1941_s0 = smov (!%p245_p8, %s1734_s0), 1 }
  0x1d   : > { %v278_v6 = vstv %s277_s30  ;;  %s307_s18 = sld [smem:[#allocation3 + %s306_s17]]  ;;  %s1646_s19 = sshll.u32 %s1941_s0, 4 }
  0x1e   : > { %v279_v7 = vsel %vm275_vm1, %v278_v6, %v274_v5  ;;  %v283_v8 = vstv %s282_s8  ;;  %s1747_s20 = sshll.u32 %s1941_s0, 5  ;;  %s1761_s0 = scalar_lea.vmem %s1934_s1, %s1646_s19 }
  0x1f   : > { %v284_v9 = vsel %vm280_vm2, %v283_v8, %v279_v7  ;;  %v288_v10 = vstv %s287_s10  ;;  %s1756_s23 = scalar_lea.vmem %s1935_s2, %s1747_s20  ;;  %v320_v23 = vld [vmem:[%s1761_s0] sm:$0xf]  ;;  %v1605_v40 = vld [vmem:[%s1761_s0 + $0x4] sm:$0xf]  ;;  %v1618_v62 = vld [vmem:[%s1761_s0 + $0x8] sm:$0xf]  ;;  %s1909_s13 = scalar_lea.vmem %s1938_s5, %s1747_s20 }
  0x20   : > { %v289_v11 = vsel %vm285_vm3, %v288_v10, %v284_v9  ;;  %v293_v12 = vstv %s292_s12  ;;  %v487_v18 = vld [vmem:[%s1756_s23] sm:$0xff]  ;;  %v1613_v27 = vld [vmem:[%s1756_s23 + $0x8] sm:$0xff]  ;;  %v1626_v57 = vld [vmem:[%s1756_s23 + $0x10] sm:$0xff] }
  0x21   : > { %v294_v14 = vsel %vm290_vm4, %v293_v12, %v289_v11  ;;  %v298_v15 = vstv %s297_s14  ;;  %v489_v22 = vcombine.high %v487_v18, %v487_v18  ;;  %v739_v31 = vcombine.high %v1613_v27, %v1613_v27 }
  0x22   : > { %v299_v16 = vsel %vm295_vm5, %v298_v15, %v294_v14  ;;  %v303_v17 = vstv %s302_s16  ;;  %v983_v61 = vcombine.high %v1626_v57, %v1626_v57  ;;  %s264_s16 = scalar_lea.vmem %s1939_s6, %s1747_s20 }
  0x23   : > { %v304_v19 = vsel %vm300_vm6, %v303_v17, %v299_v16  ;;  %v308_v20 = vstv %s307_s18 }
  0x24   : > { %v1764_v21 = vsel %vm305_vm7, %v308_v20, %v304_v19 }
  0x25   : > { %vm311_vm8 = vcmp.eq.s32.totalorder %v1750_v13, %v1764_v21  ;;  %vm310_vm9 = vcmp.eq.s32.totalorder %v1742_v4, %v1764_v21 }
  0x26   : > { %1594 = vmatprep.subr.msk.mxu0 %vm311_vm8, %v1689_v24 }
  0x27   : > { %1595 = vmatpush1.msk.msra.mxu0 %vm310_vm9, %v1689_v24 }
  0x28   : > { %1596 = vmatmul.mubr.msk.f32.vlgmr.msra.gmra.mrb[0].mxu0 %vm321_vm10, %v320_v23  ;;  %1601 = vmatprep.subr.msk.mxu0 %vm403_vm11, %v489_v22 }
  0x29   : > { %1602 = vmatpush1.msk.msra.mxu0 %vm403_vm11, %v487_v18  ;;  %564 = vmatprep.mubr.f32.mxu0 %v1688_v1 }
  0x2c   : > { %1603 = vmatmul.mubr.msk.f32.vlgmr.msra.gmra.mrb[2].mxu0 %vm396_vm12, %v1786_v25 }
  0x2d   : > { %570 = vmatprep.mubr.f32.mxu0 %v1688_v1 }
  0x30   : > { %1604 = vmatmul.mubr.msk.f32.gmra.mrb[4].mxu0 %vm396_vm12, %v1794_v26 }
  0x31   : > { %723 = vmatprep.mubr.f32.mxu0 %v1688_v1 }
  0xfb   : > { %v391_v28 = vpop.f32.mrb[0].mxu0 }
  0xfc   : > { %v393_v29 = vpop.f32.mrb[1].mxu0 }
  0xfd   : > { %1597 = vmatprep.subr.msk.mxu1 %vm403_vm11, %v393_v29 }
  0xfe   : > { %1598 = vmatpush1.msk.msra.mxu1 %vm403_vm11, %v391_v28 }
  0xff   : > { %1599 = vmatmul.mubr.msk.f32.vlgmr.msra.gmra.mrb[0].mxu1 %vm396_vm12, %v1803_v30  ;;  %1606 = vmatprep.subr.msk.mxu1 %vm311_vm8, %v1689_v24  ;;  %v566_v32 = vpop.f32.mrb[2].mxu0 }
 0x100   : > { %480 = vmatprep.mubr.f32.mxu1 %v1688_v1  ;;  %1607 = vmatpush1.msk.msra.mxu1 %vm310_vm9, %v1689_v24  ;;  %v1337_v34 = vmul.f32 %v566_v32, %v566_v32  ;;  %v568_v35 = vpop.f32.mrb[3].mxu0 }
 0x101   : > { %v1338_v36 = vmul.f32 %v568_v35, %v568_v35  ;;  %v1329_v37 = vadd.f32 %v568_v35, %v566_v32  ;;  %1614 = vmatprep.subr.msk.mxu1 %vm403_vm11, %v739_v31  ;;  %v1639_v32 = vld [vmem:[%s1756_s23 + $0x18] sm:$0xff] }
 0x102   : > { %v1227_v35 = vcombine.high %v1639_v32, %v1639_v32 }
 0x103   : > { %1600 = vmatmul.mubr.msk.f32.gmra.mrb[2].mxu1 %vm396_vm12, %v1817_v33  ;;  %v572_v38 = vpop.f32.mrb[4].mxu0  ;;  %1330 = vadd.xlane.f32.xlu0 %v1329_v37  ;;  %v1341_v39 = vadd.f32 %v1338_v36, %v1337_v34 }
 0x104   : > { %646 = vmatprep.mubr.f32.mxu1 %v1688_v1  ;;  %v574_v41 = vpop.f32.mrb[5].mxu0  ;;  %v1339_v43 = vmul.f32 %v572_v38, %v572_v38 }
 0x105   : > { %v1332_v42 = vadd.f32 %v574_v41, %v572_v38  ;;  %v1340_v44 = vmul.f32 %v574_v41, %v574_v41 }
 0x107   : > { %1608 = vmatmul.mubr.msk.f32.vlgmr.msra.gmra.mrb[4].mxu1 %vm321_vm10, %v1605_v40  ;;  %1333 = vadd.xlane.f32.xlu1 %v1332_v42  ;;  %v1344_v45 = vadd.f32 %v1340_v44, %v1339_v43 }
 0x108   : > { %1342 = vadd.xlane.f32.xlu0 %v1341_v39  ;;  %1615 = vmatpush1.msk.msra.mxu1 %vm403_vm11, %v1613_v27 }
 0x109   : > { %808 = vmatprep.mubr.f32.mxu1 %v1688_v1 }
 0x10b   : > { %1616 = vmatmul.mubr.msk.f32.vlgmr.msra.gmra.mrb[6].mxu1 %vm396_vm12, %v1786_v25  ;;  %1345 = vadd.xlane.f32.xlu1 %v1344_v45 }
 0x10c   : > { %814 = vmatprep.mubr.f32.mxu1 %v1688_v1 }
 0x10f   : > { %1617 = vmatmul.mubr.msk.f32.gmra.mrb[8].mxu1 %vm396_vm12, %v1794_v26 }
 0x110   : > { %967 = vmatprep.mubr.f32.mxu1 %v1688_v1 }
 0x1d2   : > { %v476_v46 = vpop.f32.mrb[0].mxu1 }
 0x1d3   : > { %v1317_v47 = vmul.f32 %v476_v46, %v476_v46  ;;  %v478_v48 = vpop.f32.mrb[1].mxu1 }
 0x1d4   : > { %v1318_v49 = vmul.f32 %v478_v48, %v478_v48  ;;  %v1309_v50 = vadd.f32 %v478_v48, %v476_v46  ;;  %v1631_v46 = vld [vmem:[%s1761_s0 + $0xc] sm:$0xf] }
 0x1d6   : > { %1310 = vadd.xlane.f32.xlu0 %v1309_v50  ;;  %v482_v51 = vpop.f32.mrb[2].mxu1  ;;  %v1321_v52 = vadd.f32 %v1318_v49, %v1317_v47 }
 0x1d7   : > { %v1319_v53 = vmul.f32 %v482_v51, %v482_v51  ;;  %v484_v54 = vpop.f32.mrb[3].mxu1 }
 0x1d8   : > { %v1320_v55 = vmul.f32 %v484_v54, %v484_v54  ;;  %1322 = vadd.xlane.f32.xlu1 %v1321_v52  ;;  %v1312_v56 = vadd.f32 %v484_v54, %v482_v51 }
 0x1da   : > { %1313 = vadd.xlane.f32.xlu0 %v1312_v56  ;;  %v648_v58 = vpop.f32.mrb[4].mxu1  ;;  %v1324_v59 = vadd.f32 %v1320_v55, %v1319_v53 }
 0x1db   : > { %v650_v60 = vpop.f32.mrb[5].mxu1 }
 0x1dc   : > { %1325 = vadd.xlane.f32.xlu1 %v1324_v59  ;;  %1609 = vmatprep.subr.msk.mxu0 %vm403_vm11, %v650_v60 }
 0x1dd   : > { %1610 = vmatpush1.msk.msra.mxu0 %vm403_vm11, %v648_v58 }
 0x1de   : > { %1611 = vmatmul.mubr.msk.f32.vlgmr.msra.gmra.mrb[6].mxu0 %vm396_vm12, %v1803_v30  ;;  %1619 = vmatprep.subr.msk.mxu0 %vm311_vm8, %v1689_v24  ;;  %v810_v63 = vpop.f32.mrb[6].mxu1 }
 0x1df   : > { %729 = vmatprep.mubr.f32.mxu0 %v1688_v1  ;;  %1620 = vmatpush1.msk.msra.mxu0 %vm310_vm9, %v1689_v24  ;;  %v1377_v0 = vmul.f32 %v810_v63, %v810_v63  ;;  %v812_v2 = vpop.f32.mrb[7].mxu1 }
 0x1e0   : > { %1627 = vmatprep.subr.msk.mxu0 %vm403_vm11, %v983_v61  ;;  %v1378_v3 = vmul.f32 %v812_v2, %v812_v2  ;;  %v1369_v5 = vadd.f32 %v812_v2, %v810_v63  ;;  %v1331_v2 = vpop.xlane.xlu0 %1330 }
 0x1e2   : > { %1612 = vmatmul.mubr.msk.f32.gmra.mrb[8].mxu0 %vm396_vm12, %v1817_v33  ;;  %v816_v6 = vpop.f32.mrb[8].mxu1  ;;  %1370 = vadd.xlane.f32.xlu0 %v1369_v5  ;;  %v1381_v8 = vadd.f32 %v1378_v3, %v1377_v0 }
 0x1e3   : > { %890 = vmatprep.mubr.f32.mxu0 %v1688_v1  ;;  %v818_v7 = vpop.f32.mrb[9].mxu1  ;;  %v1379_v10 = vmul.f32 %v816_v6, %v816_v6 }
 0x1e4   : > { %v1372_v9 = vadd.f32 %v818_v7, %v816_v6  ;;  %v1380_v11 = vmul.f32 %v818_v7, %v818_v7  ;;  %v1899_v7 = vpop.xlane.xlu0 %1342 }
 0x1e6   : > { %1621 = vmatmul.mubr.msk.f32.vlgmr.msra.gmra.mrb[10].mxu0 %vm321_vm10, %v1618_v62  ;;  %1373 = vadd.xlane.f32.xlu1 %v1372_v9  ;;  %v1384_v12 = vadd.f32 %v1380_v11, %v1379_v10 }
 0x1e7   : > { %1628 = vmatpush1.msk.msra.mxu0 %vm403_vm11, %v1626_v57  ;;  %1052 = vmatprep.mubr.f32.mxu0 %v1688_v1 }
 0x1e8   : > { %1382 = vadd.xlane.f32.xlu0 %v1381_v8 }
 0x1ea   : > { %1629 = vmatmul.mubr.msk.f32.vlgmr.msra.gmra.mrb[12].mxu0 %vm396_vm12, %v1786_v25  ;;  %1385 = vadd.xlane.f32.xlu1 %v1384_v12 }
 0x1eb   : > { %1058 = vmatprep.mubr.f32.mxu0 %v1688_v1 }
 0x1ee   : > { %1630 = vmatmul.mubr.msk.f32.gmra.mrb[14].mxu0 %vm396_vm12, %v1794_v26 }
 0x1ef   : > { %1211 = vmatprep.mubr.f32.mxu0 %v1688_v1 }
 0x263   : > { %v1311_v9 = vpop.xlane.xlu0 %1310 }
 0x267   : > { %v1314_v11 = vpop.xlane.xlu0 %1313 }
 0x26f   : > { %v1371_v12 = vpop.xlane.xlu0 %1370 }
 0x2b1   : > { %v725_v14 = vpop.f32.mrb[6].mxu0 }
 0x2b2   : > { %v1357_v15 = vmul.f32 %v725_v14, %v725_v14  ;;  %v727_v16 = vpop.f32.mrb[7].mxu0 }
 0x2b3   : > { %v1358_v17 = vmul.f32 %v727_v16, %v727_v16  ;;  %v1349_v18 = vadd.f32 %v727_v16, %v725_v14 }
 0x2b5   : > { %1350 = vadd.xlane.f32.xlu0 %v1349_v18  ;;  %v731_v19 = vpop.f32.mrb[8].mxu0  ;;  %v1361_v20 = vadd.f32 %v1358_v17, %v1357_v15  ;;  %v1383_v15 = vpop.xlane.xlu0 %1382 }
 0x2b6   : > { %v1359_v22 = vmul.f32 %v731_v19, %v731_v19  ;;  %v733_v23 = vpop.f32.mrb[9].mxu0 }
 0x2b7   : > { %v1360_v27 = vmul.f32 %v733_v23, %v733_v23  ;;  %v1352_v28 = vadd.f32 %v733_v23, %v731_v19 }
 0x2b9   : > { %1362 = vadd.xlane.f32.xlu0 %v1361_v20  ;;  %1353 = vadd.xlane.f32.xlu1 %v1352_v28  ;;  %v892_v29 = vpop.f32.mrb[10].mxu0  ;;  %v1364_v31 = vadd.f32 %v1360_v27, %v1359_v22 }
 0x2ba   : > { %v894_v34 = vpop.f32.mrb[11].mxu0 }
 0x2bb   : > { %1622 = vmatprep.subr.msk.mxu1 %vm403_vm11, %v894_v34 }
 0x2bc   : > { %1623 = vmatpush1.msk.msra.mxu1 %vm403_vm11, %v892_v29 }
 0x2bd   : > { %1365 = vadd.xlane.f32.xlu1 %v1364_v31  ;;  %1624 = vmatmul.mubr.msk.f32.vlgmr.msra.gmra.mrb[10].mxu1 %vm396_vm12, %v1803_v30  ;;  %v1054_v36 = vpop.f32.mrb[12].mxu0 }
 0x2be   : > { %v1417_v37 = vmul.f32 %v1054_v36, %v1054_v36  ;;  %v1056_v38 = vpop.f32.mrb[13].mxu0  ;;  %973 = vmatprep.mubr.f32.mxu1 %v1688_v1  ;;  %1632 = vmatprep.subr.msk.mxu1 %vm311_vm8, %v1689_v24 }
 0x2bf   : > { %v1418_v39 = vmul.f32 %v1056_v38, %v1056_v38  ;;  %v1409_v40 = vadd.f32 %v1056_v38, %v1054_v36  ;;  %1633 = vmatpush1.msk.msra.mxu1 %vm310_vm9, %v1689_v24 }
 0x2c0   : > { %1640 = vmatprep.subr.msk.mxu1 %vm403_vm11, %v1227_v35 }
 0x2c1   : > { %1410 = vadd.xlane.f32.xlu0 %v1409_v40  ;;  %1625 = vmatmul.mubr.msk.f32.gmra.mrb[12].mxu1 %vm396_vm12, %v1817_v33  ;;  %v1060_v41 = vpop.f32.mrb[14].mxu0  ;;  %v1421_v42 = vadd.f32 %v1418_v39, %v1417_v37 }
 0x2c2   : > { %v1419_v43 = vmul.f32 %v1060_v41, %v1060_v41  ;;  %v1062_v44 = vpop.f32.mrb[15].mxu0  ;;  %1134 = vmatprep.mubr.f32.mxu1 %v1688_v1 }
 0x2c3   : > { %v1420_v13 = vmul.f32 %v1062_v44, %v1062_v44  ;;  %v1412_v45 = vadd.f32 %v1062_v44, %v1060_v41 }
 0x2c5   : > { %1422 = vadd.xlane.f32.xlu0 %v1421_v42  ;;  %1413 = vadd.xlane.f32.xlu1 %v1412_v45  ;;  %v1424_v47 = vadd.f32 %v1420_v13, %v1419_v43  ;;  %v1375_v43 = vadd.f32 %v1371_v12, %v1331_v2 }
 0x2c6   : > { %1634 = vmatmul.mubr.msk.f32.vlgmr.msra.gmra.mrb[14].mxu1 %vm321_vm10, %v1631_v46 }
 0x2c7   : > { %1641 = vmatpush1.msk.msra.mxu1 %vm403_vm11, %v1639_v32  ;;  %1296 = vmatprep.mubr.f32.mxu1 %v1688_v1 }
 0x2c9   : > { %1425 = vadd.xlane.f32.xlu1 %v1424_v47 }
 0x2ca   : > { %1642 = vmatmul.mubr.msk.f32.vlgmr.msra.gmra.mrb[16].mxu1 %vm396_vm12, %v1786_v25 }
 0x2cb   : > { %1302 = vmatprep.mubr.f32.mxu1 %v1688_v1 }
 0x2ce   : > { %1643 = vmatmul.mubr.msk.f32.gmra.mrb[18].mxu1 %vm396_vm12, %v1794_v26 }
 0x342   : > { %v1351_v17 = vpop.xlane.xlu0 %1350 }
 0x343   : > { %v1355_v28 = vadd.f32 %v1351_v17, %v1311_v9 }
 0x346   : > { %v1363_v19 = vpop.xlane.xlu0 %1362 }
 0x34e   : > { %v1411_v22 = vpop.xlane.xlu0 %1410 }
 0x34f   : > { %v1415_v44 = vadd.f32 %v1411_v22, %v1375_v43 }
 0x352   : > { %v1423_v27 = vpop.xlane.xlu0 %1422 }
 0x390   : > { %v969_v4 = vpop.f32.mrb[10].mxu1 }
 0x391   : > { %v1397_v21 = vmul.f32 %v969_v4, %v969_v4  ;;  %v971_v24 = vpop.f32.mrb[11].mxu1 }
 0x392   : > { %v1398_v48 = vmul.f32 %v971_v24, %v971_v24  ;;  %v1389_v49 = vadd.f32 %v971_v24, %v969_v4 }
 0x394   : > { %1390 = vadd.xlane.f32.xlu0 %v1389_v49  ;;  %v975_v50 = vpop.f32.mrb[12].mxu1  ;;  %v1401_v51 = vadd.f32 %v1398_v48, %v1397_v21 }
 0x395   : > { %v1399_v52 = vmul.f32 %v975_v50, %v975_v50  ;;  %v977_v53 = vpop.f32.mrb[13].mxu1 }
 0x396   : > { %v1400_v54 = vmul.f32 %v977_v53, %v977_v53  ;;  %v1392_v55 = vadd.f32 %v977_v53, %v975_v50 }
 0x398   : > { %1402 = vadd.xlane.f32.xlu0 %v1401_v51  ;;  %1393 = vadd.xlane.f32.xlu1 %v1392_v55  ;;  %v1404_v25 = vadd.f32 %v1400_v54, %v1399_v52 }
 0x399   : > { %v1136_v56 = vpop.f32.mrb[14].mxu1 }
 0x39a   : > { %v1138_v57 = vpop.f32.mrb[15].mxu1 }
 0x39b   : > { %1635 = vmatprep.subr.msk.mxu0 %vm403_vm11, %v1138_v57 }
 0x39c   : > { %1636 = vmatpush1.msk.msra.mxu0 %vm403_vm11, %v1136_v56  ;;  %1405 = vadd.xlane.f32.xlu1 %v1404_v25 }
 0x39d   : > { %1637 = vmatmul.mubr.msk.f32.vlgmr.msra.gmra.mrb[16].mxu0 %vm396_vm12, %v1803_v30  ;;  %v1298_v26 = vpop.f32.mrb[16].mxu1  ;;  %v1334_v30 = vpop.xlane.xlu1 %1333 }
 0x39e   : > { %v1300_v58 = vpop.f32.mrb[17].mxu1  ;;  %1217 = vmatprep.mubr.f32.mxu0 %v1688_v1  ;;  %v1457_v63 = vmul.f32 %v1298_v26, %v1298_v26 }
 0x39f   : > { %v1449_v59 = vadd.f32 %v1300_v58, %v1298_v26  ;;  %v1458_v0 = vmul.f32 %v1300_v58, %v1300_v58 }
 0x3a1   : > { %1450 = vadd.xlane.f32.xlu0 %v1449_v59  ;;  %1638 = vmatmul.mubr.msk.f32.gmra.mrb[18].mxu0 %vm396_vm12, %v1817_v33  ;;  %v1304_v60 = vpop.f32.mrb[18].mxu1  ;;  %v1461_v6 = vadd.f32 %v1458_v0, %v1457_v63  ;;  %v1901_v1 = vpop.xlane.xlu1 %1345 }
 0x3a2   : > { %v1306_v61 = vpop.f32.mrb[19].mxu1  ;;  %v1459_v3 = vmul.f32 %v1304_v60, %v1304_v60 }
 0x3a3   : > { %v1452_v62 = vadd.f32 %v1306_v61, %v1304_v60  ;;  %v1460_v5 = vmul.f32 %v1306_v61, %v1306_v61  ;;  %v1387_v61 = vadd.f32 %v1383_v15, %v1899_v7 }
 0x3a5   : > { %1453 = vadd.xlane.f32.xlu1 %v1452_v62  ;;  %v1464_v8 = vadd.f32 %v1460_v5, %v1459_v3  ;;  %v1323_v10 = vpop.xlane.xlu1 %1322  ;;  %v1427_v0 = vadd.f32 %v1423_v27, %v1387_v61 }
 0x3a6   : > { %v1367_v34 = vadd.f32 %v1363_v19, %v1323_v10 }
 0x3a9   : > { %v1326_v33 = vpop.xlane.xlu1 %1325 }
 0x3ad   : > { %v1374_v14 = vpop.xlane.xlu1 %1373 }
 0x3ae   : > { %v1376_v45 = vadd.f32 %v1374_v14, %v1334_v30 }
 0x3b1   : > { %v1903_v16 = vpop.xlane.xlu1 %1385 }
 0x3b2   : > { %v1388_v5 = vadd.f32 %v1903_v16, %v1901_v1 }
 0x3b5   : > { %v1354_v18 = vpop.xlane.xlu1 %1353 }
 0x3b6   : > { %v1356_v35 = vadd.f32 %v1354_v18, %v1314_v11 }
 0x3b9   : > { %v1366_v20 = vpop.xlane.xlu1 %1365 }
 0x3ba   : > { %v1368_v40 = vadd.f32 %v1366_v20, %v1326_v33 }
 0x3bd   : > { %v1414_v23 = vpop.xlane.xlu1 %1413 }
 0x3be   : > { %v1416_v47 = vadd.f32 %v1414_v23, %v1376_v45 }
 0x3c1   : > { %v1426_v29 = vpop.xlane.xlu1 %1425 }
 0x421   : > { %v1391_v31 = vpop.xlane.xlu0 %1390 }
 0x422   : > { %v1395_v32 = vadd.f32 %v1391_v31, %v1355_v28 }
 0x425   : > { %v1403_v36 = vpop.xlane.xlu0 %1402  ;;  %v1394_v37 = vpop.xlane.xlu1 %1393 }
 0x426   : > { %v1407_v38 = vadd.f32 %v1403_v36, %v1367_v34  ;;  %v1396_v39 = vadd.f32 %v1394_v37, %v1356_v35 }
 0x429   : > { %v1406_v41 = vpop.xlane.xlu1 %1405 }
 0x42a   : > { %v1408_v42 = vadd.f32 %v1406_v41, %v1368_v40 }
 0x42e   : > { %v1451_v13 = vpop.xlane.xlu0 %1450 }
 0x42f   : > { %v1455_v46 = vadd.f32 %v1451_v13, %v1415_v44 }
 0x431   : > { %1472 = vst.msk [vmem:[%s1909_s13 + $0x10] sm:$0xff] %vm1469_vm13, %v1455_v46 }
 0x432   : > { %v1454_v4 = vpop.xlane.xlu1 %1453 }
 0x433   : > { %v1456_v21 = vadd.f32 %v1454_v4, %v1416_v47 }
 0x435   : > { %1473 = vst.msk [vmem:[%s1909_s13 + $0x18] sm:$0xff] %vm1469_vm13, %v1456_v21 }
 0x470   : > { %v1213_v24 = vpop.f32.mrb[16].mxu0 }
 0x471   : > { %v1437_v48 = vmul.f32 %v1213_v24, %v1213_v24  ;;  %v1215_v49 = vpop.f32.mrb[17].mxu0 }
 0x472   : > { %v1438_v50 = vmul.f32 %v1215_v49, %v1215_v49  ;;  %v1429_v51 = vadd.f32 %v1215_v49, %v1213_v24 }
 0x474   : > { %1430 = vadd.xlane.f32.xlu0 %v1429_v51  ;;  %v1219_v52 = vpop.f32.mrb[18].mxu0  ;;  %v1441_v53 = vadd.f32 %v1438_v50, %v1437_v48 }
 0x475   : > { %v1439_v54 = vmul.f32 %v1219_v52, %v1219_v52  ;;  %v1221_v55 = vpop.f32.mrb[19].mxu0 }
 0x476   : > { %v1432_v25 = vadd.f32 %v1221_v55, %v1219_v52  ;;  %v1440_v56 = vmul.f32 %v1221_v55, %v1221_v55 }
 0x478   : > { %1442 = vadd.xlane.f32.xlu0 %v1441_v53  ;;  %1433 = vadd.xlane.f32.xlu1 %v1432_v25  ;;  %v1444_v57 = vadd.f32 %v1440_v56, %v1439_v54 }
 0x47c   : > { %1462 = vadd.xlane.f32.xlu0 %v1461_v6  ;;  %1445 = vadd.xlane.f32.xlu1 %v1444_v57 }
 0x480   : > { %1465 = vadd.xlane.f32.xlu1 %v1464_v8  ;;  %v1428_v8 = vadd.f32 %v1426_v29, %v1388_v5 }
 0x501   : > { %v1431_v26 = vpop.xlane.xlu0 %1430 }
 0x502   : > { %v1435_v58 = vadd.f32 %v1431_v26, %v1395_v32 }
 0x504   : > { %1470 = vst.msk [vmem:[%s1909_s13] sm:$0xff] %vm1469_vm13, %v1435_v58 }
 0x505   : > { %v1443_v59 = vpop.xlane.xlu0 %1442  ;;  %v1434_v60 = vpop.xlane.xlu1 %1433 }
 0x506   : > { %v1447_v62 = vadd.f32 %v1443_v59, %v1407_v38  ;;  %v1436_v63 = vadd.f32 %v1434_v60, %v1396_v39 }
 0x508   : > { %1474 = vst.msk [vmem:[%s264_s16] sm:$0xff] %vm1469_vm13, %v1447_v62  ;;  %1471 = vst.msk [vmem:[%s1909_s13 + $0x8] sm:$0xff] %vm1469_vm13, %v1436_v63 }
 0x509   : > { %v1463_v2 = vpop.xlane.xlu0 %1462  ;;  %v1446_v3 = vpop.xlane.xlu1 %1445 }
 0x50a   : > { %v1467_v6 = vadd.f32 %v1463_v2, %v1427_v0  ;;  %v1448_v30 = vadd.f32 %v1446_v3, %v1408_v42 }
 0x50c   : > { %1476 = vst.msk [vmem:[%s264_s16 + $0x10] sm:$0xff] %vm1469_vm13, %v1467_v6  ;;  %1475 = vst.msk [vmem:[%s264_s16 + $0x8] sm:$0xff] %vm1469_vm13, %v1448_v30 }
 0x50d   : > { %v1466_v7 = vpop.xlane.xlu1 %1465 }
 0x50e   : > { %v1468_v9 = vadd.f32 %v1466_v7, %v1428_v8 }
 0x510   : > { %1477 = vst.msk [vmem:[%s264_s16 + $0x18] sm:$0xff] %vm1469_vm13, %v1468_v9 }
 0x511 PF: > { %s23_s26 = sadd.s32 1, %s1685_s26  }
 0x512   : > { %p20_p9 = scmp.ge.s32.totalorder %s23_s26, 4  }
 0x514   :  { %22 = sbr.rel (!%p20_p9) target bundleno = 16 (0x10), region = 87 }

// kernel: graph2grid_forward.3
= control target key start
LH: loop header
LB: loop body
LE: loop exit
PB: predicated region body
PF: predicated region fallthrough
CT: control target
= control target key end

     0   :  { %s2034_s0 = inlined_call_operand.vmem [shape: s32[2,8], index: 0, kind: input, shape index: {}]   ;;  %s2035_s1 = inlined_call_operand.vmem [shape: f32[2,4,4,8], index: 1, kind: input, shape index: {}]   ;;  %s2036_s2 = inlined_call_operand.vmem [shape: f32[2,4,4,256], index: 2, kind: input, shape index: {}]   ;;  %s2037_s3 = inlined_call_operand.vmem [shape: f32[16,4], index: 3, kind: input, shape index: {}]   ;;  %s2038_s4 = inlined_call_operand.vmem [shape: f32[16,4], index: 4, kind: input, shape index: {}]   ;;  %s2039_s5 = inlined_call_operand.vmem [shape: f32[32,1], index: 5, kind: input, shape index: {}]   ;;  %s2040_s6 = inlined_call_operand.vmem [shape: f32[32,1], index: 6, kind: input, shape index: {}]   ;;  %s2041_s7 = inlined_call_operand.vmem [shape: f32[2,4,32,256], index: 7, kind: output, shape index: {}]  }
   0x1   :  { %s12_s26 = sshll.u32 %s2034_s0, 4  ;;  %s13_s26 = int_to_ptr.vmem [resolvable:$true] %s12_s26 }
   0x2   :  { %s1648_s27 = scalar_lea.vmem %s13_s26, 32  ;;  %p1653_p1 = scmp.lt.s32.totalorder %s13_s26, %s13_s26 }
   0x3   :  { %p1649_p0 = scmp.ne.s32.totalorder %s13_s26, %s1648_s27  ;;  %p1654_p2 = scmp.lt.s32.totalorder %s1648_s27, %s1648_s27 }
   0x5   :  { %p1655_p3 = por %p1654_p2, %p1653_p1 }
   0x7   :  { %p1656_p4 = pnand %p1655_p3, %p1649_p0 }
   0x9   :  { %1659 = shalt.err (!%p1656_p4)  }
   0xa   :  { %s1670_s28 = smov [#allocation3]  }
   0xb   :  { %15 = dma.vmem_to_smem %s13_s26, 32, %s1670_s28, [#allocation2] }
   0xc   :  { %1664 = dma.done.wait [#allocation2], 32 }
   0xd   :  { %1665 = vsyncadd [#allocation2], 4294967264 }
   0xe   :  { %17 = sfence }
   0xf   :  { %s1717_s29 = smov 0  }
  0x10 LB: > { %s1723_s0 = sadd.s32 4294967295, %s1668_s29   ;;  %p1541_p5 = scmp.ge.s32.totalorder %s1668_s29, 1  ;;  %s1668_s29 = sphi %s1717_s29, %s23_s29  }
  0x11   : > { %p229_p6 = scmp.lt.s32.totalorder %s1668_s29, 3 }
  0x13   : > { %p230_p7 = pnand %p1541_p5, %p229_p6 }
  0x14   : > { %v287_v0 = vlaneseq (!%p230_p7)  ;;  %s1548_s30 = sshll.u32 (!%p230_p7), %s1723_s0, 7  ;;  %p264_p8 = scmp.lt.s32.totalorder (!%p230_p7), %s1723_s0, 1  ;;  %v1671_v1 = vmov (!%p230_p7), 0.0   ;;  %vm343_vm10 = vcmask (!%p230_p7), 64512   ;;  %v1672_v22 = vmov (!%p230_p7), 1.0   ;;  %v279_v23 = vld [vmem:[%s2039_s5] sm:$0xff] (!%p230_p7) }
  0x15   : > { %233 = sbr.rel (%p230_p7) target bundleno = 1146 (0x47a), region = 44  ;;  %s294_s8 = sld [smem:[#allocation3 + %s1548_s30]] (!%p230_p7)  ;;  %411 = vmatprep.mubr.f32.mxu0 (!%p230_p7), %v1671_v1  ;;  %496 = vmatprep.mubr.f32.mxu1 (!%p230_p7), %v1671_v1  ;;  %v283_v24 = vld [vmem:[%s2039_s5 + $0x10] sm:$0xff] (!%p230_p7)  ;;  %v1673_v25 = vmov (!%p230_p7), 0   ;;  %v280_v26 = vld [vmem:[%s2039_s5 + $0x8] sm:$0xff] (!%p230_p7)  ;;  %v284_v27 = vld [vmem:[%s2039_s5 + $0x18] sm:$0xff] (!%p230_p7) }
  0x16   : > { %s298_s9 = sadd.s32 (!%p230_p7), 1, %s1548_s30  ;;  %v291_v2 = vshrl.u32 (!%p230_p7), %v287_v0, 7  ;;  %s303_s11 = sadd.s32 (!%p230_p7), 2, %s1548_s30  ;;  %v1731_v4 = vand.u32 (!%p230_p7), 127, %v287_v0  ;;  %1642 = vset.pattern.permute.xlu0 (!%p230_p7), %v1673_v25  ;;  %1643 = vset.pattern.permute.xlu1 (!%p230_p7), %v1673_v25  ;;  %v281_v28 = vld [vmem:[%s2040_s6] sm:$0xff] (!%p230_p7)  ;;  %v282_v29 = vld [vmem:[%s2040_s6 + $0x8] sm:$0xff] (!%p230_p7) }
  0x17   : > { %s299_s10 = sld [smem:[#allocation3 + %s298_s9]] (!%p230_p7)  ;;  %s308_s13 = sadd.s32 (!%p230_p7), 3, %s1548_s30  ;;  %1333 = vperm.xlu0 (!%p230_p7), %1642, %v279_v23   ;;  %1365 = vperm.xlu1 (!%p230_p7), %1643, %v283_v24   ;;  %vm425_vm11 = vcmask (!%p230_p7), 1043456   ;;  %v1785_v32 = vld [vmem:[%s2037_s3] sm:$0xff] (!%p230_p7)  ;;  %vm418_vm12 = vcmask (!%p230_p7), 31744   ;;  %v1799_v33 = vld [vmem:[%s2037_s3 + $0x8] sm:$0xff] (!%p230_p7) }
  0x18   : > { %s304_s12 = sld [smem:[#allocation3 + %s303_s11]] (!%p230_p7)  ;;  %s313_s15 = sadd.s32 (!%p230_p7), 4, %s1548_s30  ;;  %vm292_vm0 = vcmp.eq.s32.totalorder (!%p230_p7), %v291_v2, 0  ;;  %vm297_vm1 = vcmp.eq.s32.totalorder (!%p230_p7), %v291_v2, 1  ;;  %vm302_vm2 = vcmp.eq.s32.totalorder (!%p230_p7), %v291_v2, 2  ;;  %vm307_vm3 = vcmp.eq.s32.totalorder (!%p230_p7), %v291_v2, 3 }
  0x19   : > { %s309_s14 = sld [smem:[#allocation3 + %s308_s13]] (!%p230_p7)  ;;  %s318_s17 = sadd.s32 (!%p230_p7), 5, %s1548_s30  ;;  %vm312_vm4 = vcmp.eq.s32.totalorder (!%p230_p7), %v291_v2, 4  ;;  %vm317_vm5 = vcmp.eq.s32.totalorder (!%p230_p7), %v291_v2, 5  ;;  %vm322_vm6 = vcmp.eq.s32.totalorder (!%p230_p7), %v291_v2, 6  ;;  %v1740_v13 = vadd.s32 (!%p230_p7), 128, %v1731_v4 }
  0x1a   : > { %s314_s16 = sld [smem:[#allocation3 + %s313_s15]] (!%p230_p7)  ;;  %s323_s19 = sadd.s32 (!%p230_p7), 6, %s1548_s30  ;;  %vm327_vm7 = vcmp.eq.s32.totalorder (!%p230_p7), %v291_v2, 7  ;;  %v1823_v37 = vld [vmem:[%s2038_s4] sm:$0xff] (!%p230_p7)  ;;  %v1831_v38 = vld [vmem:[%s2038_s4 + $0x8] sm:$0xff] (!%p230_p7)  ;;  %v285_v39 = vld [vmem:[%s2040_s6 + $0x10] sm:$0xff] (!%p230_p7) }
  0x1b   : > { %s319_s18 = sld [smem:[#allocation3 + %s318_s17]] (!%p230_p7)  ;;  %v295_v3 = vstv (!%p230_p7), %s294_s8  ;;  %s328_s21 = sadd.s32 (!%p230_p7), 7, %s1548_s30  ;;  %1338 = vperm.xlu0 (!%p230_p7), %1642, %v280_v26   ;;  %1370 = vperm.xlu1 (!%p230_p7), %1643, %v284_v27   ;;  %v286_v40 = vld [vmem:[%s2040_s6 + $0x18] sm:$0xff] (!%p230_p7) }
  0x1c   : > { %s324_s20 = sld [smem:[#allocation3 + %s323_s19]]  ;;  %v296_v5 = vsel %vm292_vm0, %v295_v3, 0  ;;  %s2043_s0 = smov (!%p264_p8, %s1723_s0), 1 }
  0x1d   : > { %v300_v6 = vstv %s299_s10  ;;  %s329_s22 = sld [smem:[#allocation3 + %s328_s21]]  ;;  %s1627_s23 = sshll.u32 %s2043_s0, 4 }
  0x1e   : > { %v301_v7 = vsel %vm297_vm1, %v300_v6, %v296_v5  ;;  %v305_v8 = vstv %s304_s12  ;;  %s1745_s26 = scalar_lea.vmem %s2035_s1, %s1627_s23  ;;  %s1628_s21 = sshll.u32 %s2043_s0, 5 }
  0x1f   : > { %v306_v9 = vsel %vm302_vm2, %v305_v8, %v301_v7  ;;  %v310_v10 = vstv %s309_s14  ;;  %v342_v21 = vld [vmem:[%s1745_s26] sm:$0xf]  ;;  %1347 = vperm.xlu0 %1642, %v281_v28   ;;  %1352 = vperm.xlu1 %1643, %v282_v29   ;;  %v1562_v34 = vld [vmem:[%s1745_s26 + $0x4] sm:$0xf]  ;;  %s1815_s24 = scalar_lea.vmem %s2036_s2, %s1628_s21  ;;  %s1629_s12 = sshll.u32 %s2043_s0, 8 }
  0x20   : > { %v311_v11 = vsel %vm307_vm3, %v310_v10, %v306_v9  ;;  %v315_v12 = vstv %s314_s16  ;;  %v509_v35 = vld [vmem:[%s1815_s24] sm:$0xff]  ;;  %s1857_s15 = scalar_lea.vmem %s2041_s7, %s1629_s12  ;;  %v1575_v61 = vld [vmem:[%s1745_s26 + $0x8] sm:$0xf] }
  0x21   : > { %v316_v14 = vsel %vm312_vm4, %v315_v12, %v311_v11  ;;  %v320_v15 = vstv %s319_s18  ;;  %v511_v36 = vcombine.high %v509_v35, %v509_v35 }
  0x22   : > { %v321_v16 = vsel %vm317_vm5, %v320_v15, %v316_v14  ;;  %v325_v17 = vstv %s324_s20  ;;  %v1570_v14 = vld [vmem:[%s1815_s24 + $0x8] sm:$0xff] }
  0x23   : > { %v326_v18 = vsel %vm322_vm6, %v325_v17, %v321_v16  ;;  %v330_v19 = vstv %s329_s22  ;;  %1379 = vperm.xlu0 %1642, %v285_v39   ;;  %1384 = vperm.xlu1 %1643, %v286_v40   ;;  %v761_v16 = vcombine.high %v1570_v14, %v1570_v14 }
  0x24   : > { %v1747_v20 = vsel %vm327_vm7, %v330_v19, %v326_v18 }
  0x25   : > { %vm333_vm8 = vcmp.eq.s32.totalorder %v1740_v13, %v1747_v20  ;;  %vm332_vm9 = vcmp.eq.s32.totalorder %v1731_v4, %v1747_v20 }
  0x26   : > { %1551 = vmatprep.subr.msk.mxu0 %vm333_vm8, %v1672_v22 }
  0x27   : > { %1552 = vmatpush1.msk.msra.mxu0 %vm332_vm9, %v1672_v22 }
  0x28   : > { %1553 = vmatmul.mubr.msk.f32.vlgmr.msra.gmra.mrb[0].mxu0 %vm343_vm10, %v342_v21  ;;  %1558 = vmatprep.subr.msk.mxu0 %vm425_vm11, %v511_v36 }
  0x29   : > { %586 = vmatprep.mubr.f32.mxu0 %v1671_v1  ;;  %1559 = vmatpush1.msk.msra.mxu0 %vm425_vm11, %v509_v35  ;;  %v1588_v35 = vld [vmem:[%s1745_s26 + $0xc] sm:$0xf] }
  0x2c   : > { %1560 = vmatmul.mubr.msk.f32.vlgmr.msra.gmra.mrb[2].mxu0 %vm418_vm12, %v1823_v37 }
  0x2d   : > { %592 = vmatprep.mubr.f32.mxu0 %v1671_v1 }
  0x30   : > { %1561 = vmatmul.mubr.msk.f32.gmra.mrb[4].mxu0 %vm418_vm12, %v1831_v38 }
  0x31   : > { %745 = vmatprep.mubr.f32.mxu0 %v1671_v1 }
  0x96   : > { %v1842_v41 = vpop.permute.xlu0 %1333  ;;  %v1844_v42 = vpop.permute.xlu1 %1365 }
  0x9a   : > { %v1846_v43 = vpop.permute.xlu0 %1338  ;;  %v1848_v44 = vpop.permute.xlu1 %1370 }
  0x9e   : > { %v1851_v46 = vpop.permute.xlu0 %1347  ;;  %v1862_v53 = vpop.permute.xlu1 %1352 }
  0xa2   : > { %v1891_v63 = vpop.permute.xlu0 %1379  ;;  %v1897_v8 = vpop.permute.xlu1 %1384 }
  0xfb   : > { %v413_v30 = vpop.f32.mrb[0].mxu0 }
  0xfc   : > { %v415_v31 = vpop.f32.mrb[1].mxu0 }
  0xfd   : > { %1554 = vmatprep.subr.msk.mxu1 %vm425_vm11, %v415_v31 }
  0xfe   : > { %1555 = vmatpush1.msk.msra.mxu1 %vm425_vm11, %v413_v30 }
  0xff   : > { %1556 = vmatmul.mubr.msk.f32.vlgmr.msra.gmra.mrb[0].mxu1 %vm418_vm12, %v1785_v32  ;;  %1563 = vmatprep.subr.msk.mxu1 %vm333_vm8, %v1672_v22  ;;  %v588_v62 = vpop.f32.mrb[2].mxu0 }
 0x100   : > { %502 = vmatprep.mubr.f32.mxu1 %v1671_v1  ;;  %1564 = vmatpush1.msk.msra.mxu1 %vm332_vm9, %v1672_v22  ;;  %v1373_v0 = vmul.f32 %v1844_v42, %v588_v62  ;;  %v590_v2 = vpop.f32.mrb[3].mxu0 }
 0x101   : > { %v1374_v3 = vmul.f32 %v1844_v42, %v590_v2  ;;  %1571 = vmatprep.subr.msk.mxu1 %vm425_vm11, %v761_v16 }
 0x102   : > { %v1387_v5 = vadd.f32 %v1891_v63, %v1373_v0 }
 0x103   : > { %1557 = vmatmul.mubr.msk.f32.gmra.mrb[2].mxu1 %vm418_vm12, %v1799_v33  ;;  %v1388_v6 = vadd.f32 %v1891_v63, %v1374_v3  ;;  %v594_v7 = vpop.f32.mrb[4].mxu0 }
 0x104   : > { %668 = vmatprep.mubr.f32.mxu1 %v1671_v1  ;;  %1391 = vst [vmem:[%s1857_s15 + $0x20] sm:$0xff] %v1387_v5  ;;  %v1375_v9 = vmul.f32 %v1848_v44, %v594_v7  ;;  %v596_v10 = vpop.f32.mrb[5].mxu0 }
 0x105   : > { %1392 = vst [vmem:[%s1857_s15 + $0x28] sm:$0xff] %v1388_v6  ;;  %v1376_v11 = vmul.f32 %v1848_v44, %v596_v10 }
 0x106   : > { %v1389_v12 = vadd.f32 %v1897_v8, %v1375_v9 }
 0x107   : > { %1565 = vmatmul.mubr.msk.f32.vlgmr.msra.gmra.mrb[4].mxu1 %vm343_vm10, %v1562_v34  ;;  %v1390_v15 = vadd.f32 %v1897_v8, %v1376_v11 }
 0x108   : > { %830 = vmatprep.mubr.f32.mxu1 %v1671_v1  ;;  %1393 = vst [vmem:[%s1857_s15 + $0x30] sm:$0xff] %v1389_v12  ;;  %1572 = vmatpush1.msk.msra.mxu1 %vm425_vm11, %v1570_v14 }
 0x109   : > { %1394 = vst [vmem:[%s1857_s15 + $0x38] sm:$0xff] %v1390_v15 }
 0x10b   : > { %1573 = vmatmul.mubr.msk.f32.vlgmr.msra.gmra.mrb[6].mxu1 %vm418_vm12, %v1823_v37 }
 0x10c   : > { %836 = vmatprep.mubr.f32.mxu1 %v1671_v1 }
 0x10f   : > { %1574 = vmatmul.mubr.msk.f32.gmra.mrb[8].mxu1 %vm418_vm12, %v1831_v38 }
 0x110   : > { %989 = vmatprep.mubr.f32.mxu1 %v1671_v1 }
 0x1d2   : > { %v498_v45 = vpop.f32.mrb[0].mxu1 }
 0x1d3   : > { %v1341_v47 = vmul.f32 %v1842_v41, %v498_v45  ;;  %v500_v48 = vpop.f32.mrb[1].mxu1  ;;  %v1583_v45 = vld [vmem:[%s1815_s24 + $0x10] sm:$0xff] }
 0x1d4   : > { %v1342_v49 = vmul.f32 %v1842_v41, %v500_v48 }
 0x1d5   : > { %v1355_v50 = vadd.f32 %v1851_v46, %v1341_v47  ;;  %v1596_v47 = vld [vmem:[%s1815_s24 + $0x18] sm:$0xff] }
 0x1d6   : > { %v1356_v51 = vadd.f32 %v1851_v46, %v1342_v49  ;;  %v504_v52 = vpop.f32.mrb[2].mxu1 }
 0x1d7   : > { %1359 = vst [vmem:[%s1857_s15] sm:$0xff] %v1355_v50  ;;  %v1343_v54 = vmul.f32 %v1846_v43, %v504_v52  ;;  %v506_v55 = vpop.f32.mrb[3].mxu1  ;;  %v1005_v50 = vcombine.high %v1583_v45, %v1583_v45 }
 0x1d8   : > { %1360 = vst [vmem:[%s1857_s15 + $0x8] sm:$0xff] %v1356_v51  ;;  %v1344_v56 = vmul.f32 %v1846_v43, %v506_v55  ;;  %v1249_v51 = vcombine.high %v1596_v47, %v1596_v47 }
 0x1d9   : > { %v1357_v57 = vadd.f32 %v1862_v53, %v1343_v54 }
 0x1da   : > { %v1358_v58 = vadd.f32 %v1862_v53, %v1344_v56  ;;  %v670_v59 = vpop.f32.mrb[4].mxu1 }
 0x1db   : > { %1361 = vst [vmem:[%s1857_s15 + $0x10] sm:$0xff] %v1357_v57  ;;  %v672_v60 = vpop.f32.mrb[5].mxu1 }
 0x1dc   : > { %1362 = vst [vmem:[%s1857_s15 + $0x18] sm:$0xff] %v1358_v58  ;;  %1566 = vmatprep.subr.msk.mxu0 %vm425_vm11, %v672_v60 }
 0x1dd   : > { %1567 = vmatpush1.msk.msra.mxu0 %vm425_vm11, %v670_v59 }
 0x1de   : > { %1568 = vmatmul.mubr.msk.f32.vlgmr.msra.gmra.mrb[6].mxu0 %vm418_vm12, %v1785_v32  ;;  %1576 = vmatprep.subr.msk.mxu0 %vm333_vm8, %v1672_v22  ;;  %v832_v13 = vpop.f32.mrb[6].mxu1 }
 0x1df   : > { %751 = vmatprep.mubr.f32.mxu0 %v1671_v1  ;;  %1577 = vmatpush1.msk.msra.mxu0 %vm332_vm9, %v1672_v22  ;;  %v1408_v36 = vmul.f32 %v1844_v42, %v832_v13  ;;  %v834_v39 = vpop.f32.mrb[7].mxu1 }
 0x1e0   : > { %v1409_v40 = vmul.f32 %v1844_v42, %v834_v39  ;;  %1584 = vmatprep.subr.msk.mxu0 %vm425_vm11, %v1005_v50 }
 0x1e1   : > { %v1412_v4 = vadd.f32 %v1408_v36, %v1891_v63 }
 0x1e2   : > { %1569 = vmatmul.mubr.msk.f32.gmra.mrb[8].mxu0 %vm418_vm12, %v1799_v33  ;;  %v1413_v20 = vadd.f32 %v1409_v40, %v1891_v63 }
 0x1e3   : > { %912 = vmatprep.mubr.f32.mxu0 %v1671_v1  ;;  %1605 = vst [vmem:[%s1857_s15 + $0x60] sm:$0xff] %v1412_v4 }
 0x1e4   : > { %1606 = vst [vmem:[%s1857_s15 + $0x68] sm:$0xff] %v1413_v20 }
 0x1e6   : > { %1578 = vmatmul.mubr.msk.f32.vlgmr.msra.gmra.mrb[10].mxu0 %vm343_vm10, %v1575_v61 }
 0x1e7   : > { %1074 = vmatprep.mubr.f32.mxu0 %v1671_v1  ;;  %1585 = vmatpush1.msk.msra.mxu0 %vm425_vm11, %v1583_v45 }
 0x1ea   : > { %1586 = vmatmul.mubr.msk.f32.vlgmr.msra.gmra.mrb[12].mxu0 %vm418_vm12, %v1823_v37 }
 0x1eb   : > { %1080 = vmatprep.mubr.f32.mxu0 %v1671_v1 }
 0x1ee   : > { %1587 = vmatmul.mubr.msk.f32.gmra.mrb[14].mxu0 %vm418_vm12, %v1831_v38 }
 0x1ef   : > { %1233 = vmatprep.mubr.f32.mxu0 %v1671_v1 }
 0x2b1   : > { %v747_v17 = vpop.f32.mrb[6].mxu0 }
 0x2b2   : > { %v1395_v18 = vmul.f32 %v1842_v41, %v747_v17  ;;  %v749_v19 = vpop.f32.mrb[7].mxu0 }
 0x2b3   : > { %v1396_v21 = vmul.f32 %v1842_v41, %v749_v19 }
 0x2b4   : > { %v1399_v23 = vadd.f32 %v1395_v18, %v1851_v46 }
 0x2b5   : > { %v1400_v24 = vadd.f32 %v1396_v21, %v1851_v46  ;;  %v753_v25 = vpop.f32.mrb[8].mxu0 }
 0x2b6   : > { %1601 = vst [vmem:[%s1857_s15 + $0x40] sm:$0xff] %v1399_v23  ;;  %v1397_v26 = vmul.f32 %v1846_v43, %v753_v25  ;;  %v755_v27 = vpop.f32.mrb[9].mxu0 }
 0x2b7   : > { %1602 = vst [vmem:[%s1857_s15 + $0x48] sm:$0xff] %v1400_v24  ;;  %v1398_v28 = vmul.f32 %v1846_v43, %v755_v27 }
 0x2b8   : > { %v1401_v29 = vadd.f32 %v1397_v26, %v1862_v53 }
 0x2b9   : > { %v1402_v30 = vadd.f32 %v1398_v28, %v1862_v53  ;;  %v914_v31 = vpop.f32.mrb[10].mxu0 }
 0x2ba   : > { %1603 = vst [vmem:[%s1857_s15 + $0x50] sm:$0xff] %v1401_v29  ;;  %v916_v34 = vpop.f32.mrb[11].mxu0 }
 0x2bb   : > { %1604 = vst [vmem:[%s1857_s15 + $0x58] sm:$0xff] %v1402_v30  ;;  %1579 = vmatprep.subr.msk.mxu1 %vm425_vm11, %v916_v34 }
 0x2bc   : > { %1580 = vmatpush1.msk.msra.mxu1 %vm425_vm11, %v914_v31 }
 0x2bd   : > { %1581 = vmatmul.mubr.msk.f32.vlgmr.msra.gmra.mrb[10].mxu1 %vm418_vm12, %v1785_v32  ;;  %1589 = vmatprep.subr.msk.mxu1 %vm333_vm8, %v1672_v22  ;;  %v1076_v7 = vpop.f32.mrb[12].mxu0 }
 0x2be   : > { %995 = vmatprep.mubr.f32.mxu1 %v1671_v1  ;;  %1590 = vmatpush1.msk.msra.mxu1 %vm332_vm9, %v1672_v22  ;;  %v838_v22 = vpop.f32.mrb[8].mxu1  ;;  %v1433_v10 = vmul.f32 %v1844_v42, %v1076_v7  ;;  %v1078_v11 = vpop.f32.mrb[13].mxu0 }
 0x2bf   : > { %v1410_v48 = vmul.f32 %v1848_v44, %v838_v22  ;;  %v840_v49 = vpop.f32.mrb[9].mxu1  ;;  %1597 = vmatprep.subr.msk.mxu1 %vm425_vm11, %v1249_v51  ;;  %v1434_v15 = vmul.f32 %v1844_v42, %v1078_v11 }
 0x2c0   : > { %v1411_v52 = vmul.f32 %v1848_v44, %v840_v49 }
 0x2c1   : > { %1582 = vmatmul.mubr.msk.f32.gmra.mrb[12].mxu1 %vm418_vm12, %v1799_v33  ;;  %v1414_v54 = vadd.f32 %v1410_v48, %v1897_v8  ;;  %v1082_v17 = vpop.f32.mrb[14].mxu0 }
 0x2c2   : > { %1156 = vmatprep.mubr.f32.mxu1 %v1671_v1  ;;  %v1415_v55 = vadd.f32 %v1411_v52, %v1897_v8  ;;  %v1435_v21 = vmul.f32 %v1848_v44, %v1082_v17  ;;  %v1084_v23 = vpop.f32.mrb[15].mxu0 }
 0x2c3   : > { %1607 = vst [vmem:[%s1857_s15 + $0x70] sm:$0xff] %v1414_v54  ;;  %v1436_v25 = vmul.f32 %v1848_v44, %v1084_v23 }
 0x2c4   : > { %1608 = vst [vmem:[%s1857_s15 + $0x78] sm:$0xff] %v1415_v55 }
 0x2c5   : > { %1591 = vmatmul.mubr.msk.f32.vlgmr.msra.gmra.mrb[14].mxu1 %vm343_vm10, %v1588_v35  ;;  %v1440_v28 = vadd.f32 %v1436_v25, %v1897_v8 }
 0x2c6   : > { %1318 = vmatprep.mubr.f32.mxu1 %v1671_v1  ;;  %1598 = vmatpush1.msk.msra.mxu1 %vm425_vm11, %v1596_v47 }
 0x2c7   : > { %1616 = vst [vmem:[%s1857_s15 + $0xb8] sm:$0xff] %v1440_v28 }
 0x2c9   : > { %1599 = vmatmul.mubr.msk.f32.vlgmr.msra.gmra.mrb[16].mxu1 %vm418_vm12, %v1823_v37 }
 0x2ca   : > { %1324 = vmatprep.mubr.f32.mxu1 %v1671_v1 }
 0x2cd   : > { %1600 = vmatmul.mubr.msk.f32.gmra.mrb[18].mxu1 %vm418_vm12, %v1831_v38 }
 0x390   : > { %v991_v56 = vpop.f32.mrb[10].mxu1 }
 0x391   : > { %v1420_v57 = vmul.f32 %v1842_v41, %v991_v56  ;;  %v993_v37 = vpop.f32.mrb[11].mxu1 }
 0x392   : > { %v1421_v58 = vmul.f32 %v1842_v41, %v993_v37 }
 0x393   : > { %v1424_v59 = vadd.f32 %v1420_v57, %v1851_v46 }
 0x394   : > { %v1425_v60 = vadd.f32 %v1421_v58, %v1851_v46  ;;  %v997_v61 = vpop.f32.mrb[12].mxu1 }
 0x395   : > { %1609 = vst [vmem:[%s1857_s15 + $0x80] sm:$0xff] %v1424_v59  ;;  %v1422_v62 = vmul.f32 %v1846_v43, %v997_v61  ;;  %v999_v0 = vpop.f32.mrb[13].mxu1 }
 0x396   : > { %1610 = vst [vmem:[%s1857_s15 + $0x88] sm:$0xff] %v1425_v60  ;;  %v1423_v38 = vmul.f32 %v1846_v43, %v999_v0 }
 0x397   : > { %v1426_v2 = vadd.f32 %v1422_v62, %v1862_v53 }
 0x398   : > { %v1427_v3 = vadd.f32 %v1423_v38, %v1862_v53  ;;  %v1158_v5 = vpop.f32.mrb[14].mxu1 }
 0x399   : > { %1611 = vst [vmem:[%s1857_s15 + $0x90] sm:$0xff] %v1426_v2  ;;  %v1160_v6 = vpop.f32.mrb[15].mxu1 }
 0x39a   : > { %1612 = vst [vmem:[%s1857_s15 + $0x98] sm:$0xff] %v1427_v3  ;;  %1592 = vmatprep.subr.msk.mxu0 %vm425_vm11, %v1160_v6 }
 0x39b   : > { %1593 = vmatpush1.msk.msra.mxu0 %vm425_vm11, %v1158_v5 }
 0x39c   : > { %1594 = vmatmul.mubr.msk.f32.vlgmr.msra.gmra.mrb[16].mxu0 %vm418_vm12, %v1785_v32  ;;  %v1320_v9 = vpop.f32.mrb[16].mxu1 }
 0x39d   : > { %1239 = vmatprep.mubr.f32.mxu0 %v1671_v1  ;;  %v1458_v12 = vmul.f32 %v1844_v42, %v1320_v9  ;;  %v1322_v14 = vpop.f32.mrb[17].mxu1  ;;  %v1437_v1 = vadd.f32 %v1433_v10, %v1891_v63 }
 0x39e   : > { %v1459_v32 = vmul.f32 %v1844_v42, %v1322_v14 }
 0x39f   : > { %v1462_v16 = vadd.f32 %v1458_v12, %v1891_v63  ;;  %1613 = vst [vmem:[%s1857_s15 + $0xa0] sm:$0xff] %v1437_v1 }
 0x3a0   : > { %1595 = vmatmul.mubr.msk.f32.gmra.mrb[18].mxu0 %vm418_vm12, %v1799_v33  ;;  %v1438_v33 = vadd.f32 %v1434_v15, %v1891_v63  ;;  %v1463_v18 = vadd.f32 %v1459_v32, %v1891_v63  ;;  %v1326_v19 = vpop.f32.mrb[18].mxu1  ;;  %v1439_v63 = vadd.f32 %v1435_v21, %v1897_v8 }
 0x3a1   : > { %1621 = vst [vmem:[%s1857_s15 + $0xe0] sm:$0xff] %v1462_v16  ;;  %v1460_v42 = vmul.f32 %v1848_v44, %v1326_v19  ;;  %v1328_v24 = vpop.f32.mrb[19].mxu1 }
 0x3a2   : > { %1614 = vst [vmem:[%s1857_s15 + $0xa8] sm:$0xff] %v1438_v33  ;;  %1622 = vst [vmem:[%s1857_s15 + $0xe8] sm:$0xff] %v1463_v18  ;;  %v1461_v26 = vmul.f32 %v1848_v44, %v1328_v24 }
 0x3a3   : > { %v1464_v27 = vadd.f32 %v1460_v42, %v1897_v8  ;;  %1615 = vst [vmem:[%s1857_s15 + $0xb0] sm:$0xff] %v1439_v63 }
 0x3a4   : > { %v1465_v29 = vadd.f32 %v1461_v26, %v1897_v8 }
 0x3a5   : > { %1623 = vst [vmem:[%s1857_s15 + $0xf0] sm:$0xff] %v1464_v27 }
 0x3a6   : > { %1624 = vst [vmem:[%s1857_s15 + $0xf8] sm:$0xff] %v1465_v29 }
 0x46f   : > { %v1235_v30 = vpop.f32.mrb[16].mxu0 }
 0x470   : > { %v1445_v31 = vmul.f32 %v1842_v41, %v1235_v30  ;;  %v1237_v44 = vpop.f32.mrb[17].mxu0 }
 0x471   : > { %v1446_v34 = vmul.f32 %v1842_v41, %v1237_v44 }
 0x472   : > { %v1449_v35 = vadd.f32 %v1445_v31, %v1851_v46 }
 0x473   : > { %v1450_v13 = vadd.f32 %v1446_v34, %v1851_v46  ;;  %v1241_v36 = vpop.f32.mrb[18].mxu0 }
 0x474   : > { %1617 = vst [vmem:[%s1857_s15 + $0xc0] sm:$0xff] %v1449_v35  ;;  %v1447_v8 = vmul.f32 %v1846_v43, %v1241_v36  ;;  %v1243_v39 = vpop.f32.mrb[19].mxu0 }
 0x475   : > { %1618 = vst [vmem:[%s1857_s15 + $0xc8] sm:$0xff] %v1450_v13  ;;  %v1448_v40 = vmul.f32 %v1846_v43, %v1243_v39 }
 0x476   : > { %v1451_v4 = vadd.f32 %v1447_v8, %v1862_v53 }
 0x477   : > { %v1452_v20 = vadd.f32 %v1448_v40, %v1862_v53 }
 0x478   : > { %1619 = vst [vmem:[%s1857_s15 + $0xd0] sm:$0xff] %v1451_v4 }
 0x479   : > { %1620 = vst [vmem:[%s1857_s15 + $0xd8] sm:$0xff] %v1452_v20 }
 0x47a PF: > { %s23_s29 = sadd.s32 1, %s1668_s29  }
 0x47b   : > { %p20_p9 = scmp.ge.s32.totalorder %s23_s29, 4  }
 0x47d   :  { %22 = sbr.rel (!%p20_p9) target bundleno = 16 (0x10), region = 86 }

</bundles_post_ra>
